<compile_context>
chip_gen: v7x
topology: tpu7x:2x2x1
jax: 0.10.0
libtpu: 0.0.40
codegen_flags: <defaults>
</compile_context>

<pallas_src>
import functools

import jax
import jax.numpy as jnp
from jax.experimental import pallas as pl
from jax.experimental.pallas import tpu as pltpu


_MATMUL_VMEM_LIMIT = 32 * 1024 * 1024   # safe on v5e/v6e (128 MiB) and v7x (64 MiB physical)
_GATE_ORDER = (0, 1, 3, 2)              # PyTorch gate order [i,f,g,o] -> kernel [i,f,o,g]


# ----------------------------------------------------------------------------
# small static helpers (tile/chunk selection)
# ----------------------------------------------------------------------------
def _round_up(x, m):
    return ((x + m - 1) // m) * m


def _pick_tile(dim, pref, align):
    """Largest tile <= pref that divides dim and is `align`-aligned (else full dim)."""
    if dim <= pref:
        return dim
    start = pref - (pref % align)
    for cand in range(start, 0, -align):
        if dim % cand == 0:
            return cand
    return dim


def _pick_chunk(dim, pref):
    if dim <= pref:
        return dim
    for cand in range(pref, 0, -1):
        if dim % cand == 0:
            return cand
    return 1


# ----------------------------------------------------------------------------
# Generic tiled matmul + bias kernel (used for gate precompute AND decoder)
# ----------------------------------------------------------------------------
def _matmul_bias_kernel(x_ref, w_ref, b_ref, o_ref, acc_ref):
    k = pl.program_id(2)

    @pl.when(k == 0)
    def _():
        acc_ref[...] = jnp.zeros_like(acc_ref)

    x = x_ref[...]
    if x.dtype != w_ref.dtype:           # cast activation to the (bf16) weight dtype for MXU
        x = x.astype(w_ref.dtype)
    acc_ref[...] += jnp.dot(x, w_ref[...], preferred_element_type=jnp.float32)

    @pl.when(k == pl.num_programs(2) - 1)
    def _():
        o_ref[...] = (acc_ref[...] + b_ref[...]).astype(o_ref.dtype)


def matmul_bias(x, w, b, *, tm=256, tn=512, tk=512, out_dtype=jnp.float32):
    """Tiled (M,K)@(K,N) + bias with f32 k-axis accumulation."""
    M, K = x.shape
    Kw, N = w.shape
    assert K == Kw and b.shape == (1, N)
    tm = _pick_tile(M, tm, 8)
    tn = _pick_tile(N, tn, 128)
    tk = _pick_tile(K, tk, 128)
    grid = (M // tm, N // tn, K // tk)

    return pl.pallas_call(
        _matmul_bias_kernel,
        out_shape=jax.ShapeDtypeStruct((M, N), out_dtype),
        grid_spec=pltpu.PrefetchScalarGridSpec(
            num_scalar_prefetch=0,
            grid=grid,
            in_specs=[
                pl.BlockSpec((tm, tk), lambda i, j, k: (i, k)),
                pl.BlockSpec((tk, tn), lambda i, j, k: (k, j)),
                pl.BlockSpec((1, tn), lambda i, j, k: (0, j)),
            ],
            out_specs=pl.BlockSpec((tm, tn), lambda i, j, k: (i, j)),
            scratch_shapes=[pltpu.VMEM((tm, tn), jnp.float32)],
        ),
        compiler_params=pltpu.CompilerParams(
            dimension_semantics=("parallel", "parallel", "arbitrary"),
            vmem_limit_bytes=_MATMUL_VMEM_LIMIT,
        ),
    )(x, w, b)


# ----------------------------------------------------------------------------
# LSTM recurrence kernel: consumes precomputed x-gates, does only h @ W_hh per step.
# Grid = (batch tiles ['parallel'], time chunks ['arbitrary']); h/c live in VMEM scratch.
# ----------------------------------------------------------------------------
def _lstm_chunk_kernel(gx_ref, whh_ref, y_ref, h_ref, c_ref):
    # gx_ref:  (Tc, TB, 4E) f32  precomputed x @ W_ih^T + b, gate layout [i|f|o|g]
    # whh_ref: (E, 4E)      bf16 hidden weights, same gate layout
    # y_ref:   (Tc, TB, E)  f32  hidden-state outputs for this chunk
    # h_ref/c_ref: (TB, E)  f32  state carried across time chunks
    Tc = y_ref.shape[0]
    E = y_ref.shape[-1]

    @pl.when(pl.program_id(1) == 0)       # first time chunk of this batch tile
    def _():
        h_ref[...] = jnp.zeros_like(h_ref)
        c_ref[...] = jnp.zeros_like(c_ref)

    h = h_ref[...]
    c = c_ref[...]
    for i in range(Tc):                    # static unroll; Tc is capped small
        gates = gx_ref[i] + jnp.dot(h.astype(whh_ref.dtype), whh_ref[...],
                                    preferred_element_type=jnp.float32)
        ifo = jax.nn.sigmoid(gates[:, :3 * E])   # one lane-aligned sigmoid slab (i,f,o)
        g_g = jnp.tanh(gates[:, 3 * E:])
        c = ifo[:, E:2 * E] * c + ifo[:, :E] * g_g
        h = ifo[:, 2 * E:3 * E] * jnp.tanh(c)
        y_ref[i] = h
    h_ref[...] = h
    c_ref[...] = c


def lstm_recurrence(gx, w_hh_t, *, time_chunk, batch_tile):
    T, B_p, G = gx.shape
    E_p = G // 4
    grid = (B_p // batch_tile, T // time_chunk)

    return pl.pallas_call(
        _lstm_chunk_kernel,
        out_shape=jax.ShapeDtypeStruct((T, B_p, E_p), jnp.float32),
        grid_spec=pltpu.PrefetchScalarGridSpec(
            num_scalar_prefetch=0,
            grid=grid,
            in_specs=[
                pl.BlockSpec((time_chunk, batch_tile, G), lambda b, t: (t, b, 0)),
                pl.BlockSpec((E_p, G), lambda b, t: (0, 0)),
            ],
            out_specs=pl.BlockSpec((time_chunk, batch_tile, E_p),
                                   lambda b, t: (t, b, 0)),
            scratch_shapes=[
                pltpu.VMEM((batch_tile, E_p), jnp.float32),   # h state
                pltpu.VMEM((batch_tile, E_p), jnp.float32),   # c state
            ],
        ),
        compiler_params=pltpu.CompilerParams(
            # batch tiles are independent (megacore-parallel on v7x); the time axis is a
            # true recurrence and must stay sequential.
            dimension_semantics=("parallel", "arbitrary"),
        ),
    )(gx, w_hh_t)


# ----------------------------------------------------------------------------
# Full model forward (kernel-format params)
# ----------------------------------------------------------------------------
def lstm_language_model_forward(sentence, params):
    B, T = sentence.shape
    E_p, V, V_p = params["E_p"], params["V"], params["V_p"]
    B_p = _round_up(B, 8)
    time_chunk = _pick_chunk(T, 16)
    batch_tile = _pick_tile(B_p, 128, 8)

    # Embedding lookup (frozen table), produced directly in time-major layout.
    # TODO(synk): the data-dependent row gather stays as jnp.take (XLA); a manual-DMA
    # gather kernel is not worth it at these sizes.
    sent_p = jnp.pad(sentence, ((0, B_p - B), (0, 0)))
    x = jnp.take(params["emb_p"], sent_p.T, axis=0)          # (T, B_p, E_p) f32

    for layer in params["lstm"]:
        # Non-recurrent projection of the whole sequence in one big MXU matmul.
        gx = matmul_bias(x.reshape(T * B_p, E_p), layer["w_ih_t"], layer["b"])
        # Serial part: only h @ W_hh + elementwise per timestep.
        x = lstm_recurrence(gx.reshape(T, B_p, 4 * E_p), layer["w_hh_t"],
                            time_chunk=time_chunk, batch_tile=batch_tile)

    # Single small (E-wide) transpose back to batch-major before the decoder so the
    # (potentially huge) V-wide logits never need transposing.
    h = jnp.swapaxes(x, 0, 1).reshape(B_p * T, E_p)
    logits = matmul_bias(h, params["dec_w_t"], params["dec_b"])
    return logits.reshape(B_p, T, V_p)[:B, :, :V]


# ----------------------------------------------------------------------------
# Parameters: PyTorch-layout init + kernel-layout preparation (pad / transpose / bf16)
# ----------------------------------------------------------------------------
def _bf16_roundtrip(x):
    return x.astype(jnp.bfloat16).astype(jnp.float32)


def init_params(key, vocab_size, emb_dim, stacks):
    """PyTorch-layout parameters (gate order [i,f,g,o]); weights made bf16-representable."""
    keys = iter(jax.random.split(key, 1 + 4 * stacks + 2))
    scale = 1.0 / float(emb_dim) ** 0.5

    def uni(shape):
        return _bf16_roundtrip(
            jax.random.uniform(next(keys), shape, jnp.float32, -scale, scale))

    params = {
        "embedding": jax.random.normal(next(keys), (vocab_size, emb_dim), jnp.float32),
        "lstm": [],
    }
    for _ in range(stacks):
        params["lstm"].append({
            "w_ih": uni((4 * emb_dim, emb_dim)),
            "w_hh": uni((4 * emb_dim, emb_dim)),
            "b_ih": jax.random.uniform(next(keys), (4 * emb_dim,), jnp.float32, -scale, scale),
            "b_hh": jax.random.uniform(next(keys), (4 * emb_dim,), jnp.float32, -scale, scale),
        })
    params["dec_w"] = uni((vocab_size, emb_dim))
    params["dec_b"] = jax.random.uniform(next(keys), (vocab_size,), jnp.float32, -scale, scale)
    return params


def _pack_gates(w, b, E, E_p, dtype):
    """(4E, In) PyTorch gate-stacked weight -> (In_p, 4*E_p) transposed + per-gate padded,
    gate order [i|f|o|g]; bias -> (1, 4*E_p) f32. Padded gate lanes give i=f=o=0.5, g=0, so
    padded hidden dims stay exactly 0 through the recurrence."""
    In = w.shape[1]
    In_p = _round_up(In, 128)
    order = jnp.asarray(_GATE_ORDER)
    w4 = w.reshape(4, E, In)[order]
    w4 = jnp.pad(w4, ((0, 0), (0, E_p - E), (0, In_p - In)))
    w_t = jnp.transpose(w4, (2, 0, 1)).reshape(In_p, 4 * E_p)
    b4 = jnp.pad(b.reshape(4, E)[order], ((0, 0), (0, E_p - E)))
    return w_t.astype(dtype), b4.reshape(1, 4 * E_p).astype(jnp.float32)


def prepare_params(params, compute_dtype=jnp.bfloat16):
    """Kernel-layout params: lane/sublane-friendly padding, bf16 MXU weights, f32 biases."""
    emb = params["embedding"]
    V, E = emb.shape
    E_p = _round_up(E, 128)
    V_p = _round_up(V, 128)
    kp = {
        "E": E, "E_p": E_p, "V": V, "V_p": V_p,
        "emb_p": jnp.pad(emb, ((0, 0), (0, E_p - E))),
        "lstm": [],
    }
    for layer in params["lstm"]:
        w_ih_t, b_row = _pack_gates(layer["w_ih"], layer["b_ih"] + layer["b_hh"],
                                    E, E_p, compute_dtype)
        w_hh_t, _ = _pack_gates(layer["w_hh"], jnp.zeros((4 * E,), jnp.float32),
                                E, E_p, compute_dtype)
        kp["lstm"].append({"w_ih_t": w_ih_t, "w_hh_t": w_hh_t, "b": b_row})
    kp["dec_w_t"] = jnp.pad(params["dec_w"].T,
                            ((0, E_p - E), (0, V_p - V))).astype(compute_dtype)
    kp["dec_b"] = jnp.pad(params["dec_b"], (0, V_p - V))[None, :].astype(jnp.float32)
    return kp


# ----------------------------------------------------------------------------
# Pure-JAX f32 reference (PyTorch layout / gate order) for correctness check
# ----------------------------------------------------------------------------
def _lstm_layer_ref(x, w_ih, w_hh, b_ih, b_hh):
    B, T, E = x.shape

    def step(carry, x_t):
        h, c = carry
        gates = x_t @ w_ih.T + h @ w_hh.T + b_ih + b_hh
        i_g = jax.nn.sigmoid(gates[:, :E])
        f_g = jax.nn.sigmoid(gates[:, E:2 * E])
        g_g = jnp.tanh(gates[:, 2 * E:3 * E])
        o_g = jax.nn.sigmoid(gates[:, 3 * E:])
        c = f_g * c + i_g * g_g
        h = o_g * jnp.tanh(c)
        return (h, c), h

    init = (jnp.zeros((B, E), jnp.float32), jnp.zeros((B, E), jnp.float32))
    _, ys = jax.lax.scan(step, init, jnp.swapaxes(x, 0, 1))
    return jnp.swapaxes(ys, 0, 1)


def _forward_ref(sentence, params):
    x = jnp.take(params["embedding"], sentence, axis=0)
    for layer in params["lstm"]:
        x = _lstm_layer_ref(x, layer["w_ih"], layer["w_hh"],
                            layer["b_ih"], layer["b_hh"])
    return x @ params["dec_w"].T + params["dec_b"]


if __name__ == "__main__":
    VOCAB, EMB, STACKS = 32, 32, 2
    B, T = 2, 8

    root = jax.random.PRNGKey(0)
    k_param, k_tok = jax.random.split(root)
    params = init_params(k_param, VOCAB, EMB, STACKS)
    kparams = prepare_params(params)
    sentence = jax.random.randint(k_tok, (B, T), 0, VOCAB, dtype=jnp.int32)

    fwd = jax.jit(functools.partial(lstm_language_model_forward, params=kparams))
    logits = fwd(sentence)
    jax.block_until_ready(logits)

    assert logits.shape == (B, T, VOCAB), logits.shape

    ref = _forward_ref(sentence, params)
    max_err = float(jnp.max(jnp.abs(logits - ref)))
    assert jnp.allclose(logits, ref, atol=2e-2, rtol=2e-2), max_err
    print("KERNEL_OK")
</pallas_src>

<mosaic_0001>
module attributes {stable_mosaic.version = 11 : i64} {
  func.func @_matmul_bias_kernel(%arg0: i32, %arg1: i32, %arg2: i32, %arg3: memref<64x128xf32, #tpu.memory_space<vmem>>, %arg4: memref<128x512xbf16, #tpu.memory_space<vmem>>, %arg5: memref<1x512xf32, #tpu.memory_space<vmem>>, %arg6: memref<64x512xf32, #tpu.memory_space<vmem>>, %arg7: memref<64x512xf32, #tpu.memory_space<vmem>>) attributes {dimension_semantics = [#tpu.dimension_semantics<parallel>, #tpu.dimension_semantics<parallel>, #tpu.dimension_semantics<arbitrary>], iteration_bounds = array<i64: 1, 1, 1>, scalar_prefetch = 0 : i64, scratch_operands = 1 : i64, tpu.core_type = #tpu.core_type<tc>, window_params = [{transform_indices = @transform_0, window_bounds = array<i64: 64, 128>}, {transform_indices = @transform_1, window_bounds = array<i64: 128, 512>}, {transform_indices = @transform_2, window_bounds = array<i64: 1, 512>}, {transform_indices = @transform_3, window_bounds = array<i64: 64, 512>}]} {
    %c0_i32 = arith.constant 0 : i32
    %0 = arith.cmpi eq, %arg2, %c0_i32 : i32
    %1 = arith.extui %0 : i1 to i32
    %c0_i32_0 = arith.constant 0 : i32
    %2 = arith.cmpi ne, %1, %c0_i32_0 : i32
    scf.if %2 {
      %cst_10 = arith.constant 0.000000e+00 : f32
      %13 = vector.broadcast %cst_10 : f32 to vector<64x512xf32>
      %c0_11 = arith.constant 0 : index
      %c0_12 = arith.constant 0 : index
      %14 = vector.load %arg7[%c0_11, %c0_12] : memref<64x512xf32, #tpu.memory_space<vmem>>, vector<64x512xf32>
      tpu.vector_store %arg7[%c0_11, %c0_12], %13 {strides = array<i32>} : memref<64x512xf32, #tpu.memory_space<vmem>>, vector<64x512xf32>,
    } else {
    }
    %c0 = arith.constant 0 : index
    %c0_1 = arith.constant 0 : index
    %3 = vector.load %arg3[%c0, %c0_1] : memref<64x128xf32, #tpu.memory_space<vmem>>, vector<64x128xf32>
    %4 = arith.truncf %3 : vector<64x128xf32> to vector<64x128xbf16>
    %c0_2 = arith.constant 0 : index
    %c0_3 = arith.constant 0 : index
    %5 = vector.load %arg7[%c0_2, %c0_3] : memref<64x512xf32, #tpu.memory_space<vmem>>, vector<64x512xf32>
    %c0_4 = arith.constant 0 : index
    %c0_5 = arith.constant 0 : index
    %6 = vector.load %arg4[%c0_4, %c0_5] : memref<128x512xbf16, #tpu.memory_space<vmem>>, vector<128x512xbf16>
    %cst = arith.constant dense<0.000000e+00> : vector<64x512xf32>
    %7 = tpu.matmul %4, %6, %cst {dimension_numbers = #tpu.dot_dimension_numbers<[1], [0], [0], [1], [0, 0, 1, 1], [], []>} : vector<64x128xbf16>, vector<128x512xbf16>, vector<64x512xf32> -> vector<64x512xf32>
    %8 = arith.addf %5, %7 : vector<64x512xf32>
    %c0_6 = arith.constant 0 : index
    %c0_7 = arith.constant 0 : index
    %9 = vector.load %arg7[%c0_6, %c0_7] : memref<64x512xf32, #tpu.memory_space<vmem>>, vector<64x512xf32>
    tpu.vector_store %arg7[%c0_6, %c0_7], %8 {strides = array<i32>} : memref<64x512xf32, #tpu.memory_space<vmem>>, vector<64x512xf32>,
    %c0_i32_8 = arith.constant 0 : i32
    %10 = arith.cmpi eq, %arg2, %c0_i32_8 : i32
    %11 = arith.extui %10 : i1 to i32
    %c0_i32_9 = arith.constant 0 : i32
    %12 = arith.cmpi ne, %11, %c0_i32_9 : i32
    scf.if %12 {
      %c0_10 = arith.constant 0 : index
      %c0_11 = arith.constant 0 : index
      %13 = vector.load %arg7[%c0_10, %c0_11] : memref<64x512xf32, #tpu.memory_space<vmem>>, vector<64x512xf32>
      %c0_12 = arith.constant 0 : index
      %c0_13 = arith.constant 0 : index
      %14 = vector.load %arg5[%c0_12, %c0_13] : memref<1x512xf32, #tpu.memory_space<vmem>>, vector<1x512xf32>
      %15 = vector.broadcast %14 : vector<1x512xf32> to vector<64x512xf32>
      %16 = arith.addf %13, %15 : vector<64x512xf32>
      %c0_14 = arith.constant 0 : index
      %c0_15 = arith.constant 0 : index
      %17 = vector.load %arg6[%c0_14, %c0_15] : memref<64x512xf32, #tpu.memory_space<vmem>>, vector<64x512xf32>
      tpu.vector_store %arg6[%c0_14, %c0_15], %16 {strides = array<i32>} : memref<64x512xf32, #tpu.memory_space<vmem>>, vector<64x512xf32>,
    } else {
    }
    return
  }
  func.func @transform_0(%arg0: i32, %arg1: i32, %arg2: i32) -> (i32, i32) {
    %c0_i32 = arith.constant 0 : i32
    return %arg0, %arg2 : i32, i32
  }
  func.func @transform_1(%arg0: i32, %arg1: i32, %arg2: i32) -> (i32, i32) {
    %c0_i32 = arith.constant 0 : i32
    return %arg2, %arg1 : i32, i32
  }
  func.func @transform_2(%arg0: i32, %arg1: i32, %arg2: i32) -> (i32, i32) {
    %c0_i32 = arith.constant 0 : i32
    %c0_i32_0 = arith.constant 0 : i32
    return %c0_i32, %arg1 : i32, i32
  }
  func.func @transform_3(%arg0: i32, %arg1: i32, %arg2: i32) -> (i32, i32) {
    %c0_i32 = arith.constant 0 : i32
    return %arg0, %arg1 : i32, i32
  }
}

module attributes {stable_mosaic.version = 11 : i64} {
  func.func @_lstm_chunk_kernel(%arg0: i32, %arg1: i32, %arg2: memref<8x8x512xf32, #tpu.memory_space<vmem>>, %arg3: memref<128x512xbf16, #tpu.memory_space<vmem>>, %arg4: memref<8x8x128xf32, #tpu.memory_space<vmem>>, %arg5: memref<8x128xf32, #tpu.memory_space<vmem>>, %arg6: memref<8x128xf32, #tpu.memory_space<vmem>>) attributes {dimension_semantics = [#tpu.dimension_semantics<parallel>, #tpu.dimension_semantics<arbitrary>], iteration_bounds = array<i64: 1, 1>, scalar_prefetch = 0 : i64, scratch_operands = 2 : i64, tpu.core_type = #tpu.core_type<tc>, window_params = [{transform_indices = @transform_0, window_bounds = array<i64: 8, 8, 512>}, {pipeline_mode = #tpu.pipeline_mode<synchronous>, transform_indices = @transform_1, window_bounds = array<i64: 128, 512>}, {transform_indices = @transform_2, window_bounds = array<i64: 8, 8, 128>}]} {
    %c0_i32 = arith.constant 0 : i32
    %0 = arith.cmpi eq, %arg1, %c0_i32 : i32
    %1 = arith.extui %0 : i1 to i32
    %c0_i32_0 = arith.constant 0 : i32
    %2 = arith.cmpi ne, %1, %c0_i32_0 : i32
    scf.if %2 {
      %cst_80 = arith.constant 0.000000e+00 : f32
      %207 = vector.broadcast %cst_80 : f32 to vector<8x128xf32>
      %c0_81 = arith.constant 0 : index
      %c0_82 = arith.constant 0 : index
      %208 = vector.load %arg5[%c0_81, %c0_82] : memref<8x128xf32, #tpu.memory_space<vmem>>, vector<8x128xf32>
      tpu.vector_store %arg5[%c0_81, %c0_82], %207 {strides = array<i32>} : memref<8x128xf32, #tpu.memory_space<vmem>>, vector<8x128xf32>,
      %cst_83 = arith.constant 0.000000e+00 : f32
      %209 = vector.broadcast %cst_83 : f32 to vector<8x128xf32>
      %c0_84 = arith.constant 0 : index
      %c0_85 = arith.constant 0 : index
      %210 = vector.load %arg6[%c0_84, %c0_85] : memref<8x128xf32, #tpu.memory_space<vmem>>, vector<8x128xf32>
      tpu.vector_store %arg6[%c0_84, %c0_85], %209 {strides = array<i32>} : memref<8x128xf32, #tpu.memory_space<vmem>>, vector<8x128xf32>,
    } else {
    }
    %c0 = arith.constant 0 : index
    %c0_1 = arith.constant 0 : index
    %3 = vector.load %arg5[%c0, %c0_1] : memref<8x128xf32, #tpu.memory_space<vmem>>, vector<8x128xf32>
    %c0_2 = arith.constant 0 : index
    %c0_3 = arith.constant 0 : index
    %4 = vector.load %arg6[%c0_2, %c0_3] : memref<8x128xf32, #tpu.memory_space<vmem>>, vector<8x128xf32>
    %c0_4 = arith.constant 0 : index
    %c0_5 = arith.constant 0 : index
    %c0_6 = arith.constant 0 : index
    %5 = vector.load %arg2[%c0_4, %c0_5, %c0_6] : memref<8x8x512xf32, #tpu.memory_space<vmem>>, vector<1x8x512xf32>
    %6 = vector.shape_cast %5 : vector<1x8x512xf32> to vector<8x512xf32>
    %7 = arith.truncf %3 : vector<8x128xf32> to vector<8x128xbf16>
    %c0_7 = arith.constant 0 : index
    %c0_8 = arith.constant 0 : index
    %8 = vector.load %arg3[%c0_7, %c0_8] : memref<128x512xbf16, #tpu.memory_space<vmem>>, vector<128x512xbf16>
    %cst = arith.constant dense<0.000000e+00> : vector<8x512xf32>
    %9 = tpu.matmul %7, %8, %cst {dimension_numbers = #tpu.dot_dimension_numbers<[1], [0], [0], [1], [0, 0, 1, 1], [], []>} : vector<8x128xbf16>, vector<128x512xbf16>, vector<8x512xf32> -> vector<8x512xf32>
    %10 = arith.addf %6, %9 : vector<8x512xf32>
    %11 = vector.extract_strided_slice %10 {offsets = [0, 0], sizes = [8, 384], strides = [1, 1]} : vector<8x512xf32> to vector<8x384xf32>
    %12 = arith.negf %11 : vector<8x384xf32>
    %13 = math.exp %12 : vector<8x384xf32>
    %cst_9 = arith.constant 1.000000e+00 : f32
    %14 = vector.broadcast %cst_9 : f32 to vector<8x384xf32>
    %15 = arith.addf %14, %13 : vector<8x384xf32>
    %16 = arith.divf %14, %15 : vector<8x384xf32>
    %17 = vector.extract_strided_slice %10 {offsets = [0, 384], sizes = [8, 128], strides = [1, 1]} : vector<8x512xf32> to vector<8x128xf32>
    %18 = math.tanh %17 : vector<8x128xf32>
    %19 = vector.extract_strided_slice %16 {offsets = [0, 128], sizes = [8, 128], strides = [1, 1]} : vector<8x384xf32> to vector<8x128xf32>
    %20 = arith.mulf %19, %4 : vector<8x128xf32>
    %21 = vector.extract_strided_slice %16 {offsets = [0, 0], sizes = [8, 128], strides = [1, 1]} : vector<8x384xf32> to vector<8x128xf32>
    %22 = arith.mulf %21, %18 : vector<8x128xf32>
    %23 = arith.addf %20, %22 : vector<8x128xf32>
    %24 = vector.extract_strided_slice %16 {offsets = [0, 256], sizes = [8, 128], strides = [1, 1]} : vector<8x384xf32> to vector<8x128xf32>
    %25 = math.tanh %23 : vector<8x128xf32>
    %26 = arith.mulf %24, %25 : vector<8x128xf32>
    %c0_10 = arith.constant 0 : index
    %c0_11 = arith.constant 0 : index
    %c0_12 = arith.constant 0 : index
    %27 = vector.load %arg4[%c0_10, %c0_11, %c0_12] : memref<8x8x128xf32, #tpu.memory_space<vmem>>, vector<1x8x128xf32>
    %28 = vector.shape_cast %27 : vector<1x8x128xf32> to vector<8x128xf32>
    %29 = vector.shape_cast %26 : vector<8x128xf32> to vector<1x8x128xf32>
    tpu.vector_store %arg4[%c0_10, %c0_11, %c0_12], %29 {strides = array<i32>} : memref<8x8x128xf32, #tpu.memory_space<vmem>>, vector<1x8x128xf32>,
    %c1 = arith.constant 1 : index
    %c0_13 = arith.constant 0 : index
    %c0_14 = arith.constant 0 : index
    %30 = vector.load %arg2[%c1, %c0_13, %c0_14] : memref<8x8x512xf32, #tpu.memory_space<vmem>>, vector<1x8x512xf32>
    %31 = vector.shape_cast %30 : vector<1x8x512xf32> to vector<8x512xf32>
    %32 = arith.truncf %26 : vector<8x128xf32> to vector<8x128xbf16>
    %c0_15 = arith.constant 0 : index
    %c0_16 = arith.constant 0 : index
    %33 = vector.load %arg3[%c0_15, %c0_16] : memref<128x512xbf16, #tpu.memory_space<vmem>>, vector<128x512xbf16>
    %cst_17 = arith.constant dense<0.000000e+00> : vector<8x512xf32>
    %34 = tpu.matmul %32, %33, %cst_17 {dimension_numbers = #tpu.dot_dimension_numbers<[1], [0], [0], [1], [0, 0, 1, 1], [], []>} : vector<8x128xbf16>, vector<128x512xbf16>, vector<8x512xf32> -> vector<8x512xf32>
    %35 = arith.addf %31, %34 : vector<8x512xf32>
    %36 = vector.extract_strided_slice %35 {offsets = [0, 0], sizes = [8, 384], strides = [1, 1]} : vector<8x512xf32> to vector<8x384xf32>
    %37 = arith.negf %36 : vector<8x384xf32>
    %38 = math.exp %37 : vector<8x384xf32>
    %cst_18 = arith.constant 1.000000e+00 : f32
    %39 = vector.broadcast %cst_18 : f32 to vector<8x384xf32>
    %40 = arith.addf %39, %38 : vector<8x384xf32>
    %41 = arith.divf %39, %40 : vector<8x384xf32>
    %42 = vector.extract_strided_slice %35 {offsets = [0, 384], sizes = [8, 128], strides = [1, 1]} : vector<8x512xf32> to vector<8x128xf32>
    %43 = math.tanh %42 : vector<8x128xf32>
    %44 = vector.extract_strided_slice %41 {offsets = [0, 128], sizes = [8, 128], strides = [1, 1]} : vector<8x384xf32> to vector<8x128xf32>
    %45 = arith.mulf %44, %23 : vector<8x128xf32>
    %46 = vector.extract_strided_slice %41 {offsets = [0, 0], sizes = [8, 128], strides = [1, 1]} : vector<8x384xf32> to vector<8x128xf32>
    %47 = arith.mulf %46, %43 : vector<8x128xf32>
    %48 = arith.addf %45, %47 : vector<8x128xf32>
    %49 = vector.extract_strided_slice %41 {offsets = [0, 256], sizes = [8, 128], strides = [1, 1]} : vector<8x384xf32> to vector<8x128xf32>
    %50 = math.tanh %48 : vector<8x128xf32>
    %51 = arith.mulf %49, %50 : vector<8x128xf32>
    %c1_19 = arith.constant 1 : index
    %c0_20 = arith.constant 0 : index
    %c0_21 = arith.constant 0 : index
    %52 = vector.load %arg4[%c1_19, %c0_20, %c0_21] : memref<8x8x128xf32, #tpu.memory_space<vmem>>, vector<1x8x128xf32>
    %53 = vector.shape_cast %52 : vector<1x8x128xf32> to vector<8x128xf32>
    %54 = vector.shape_cast %51 : vector<8x128xf32> to vector<1x8x128xf32>
    tpu.vector_store %arg4[%c1_19, %c0_20, %c0_21], %54 {strides = array<i32>} : memref<8x8x128xf32, #tpu.memory_space<vmem>>, vector<1x8x128xf32>,
    %c2 = arith.constant 2 : index
    %c0_22 = arith.constant 0 : index
    %c0_23 = arith.constant 0 : index
    %55 = vector.load %arg2[%c2, %c0_22, %c0_23] : memref<8x8x512xf32, #tpu.memory_space<vmem>>, vector<1x8x512xf32>
    %56 = vector.shape_cast %55 : vector<1x8x512xf32> to vector<8x512xf32>
    %57 = arith.truncf %51 : vector<8x128xf32> to vector<8x128xbf16>
    %c0_24 = arith.constant 0 : index
    %c0_25 = arith.constant 0 : index
    %58 = vector.load %arg3[%c0_24, %c0_25] : memref<128x512xbf16, #tpu.memory_space<vmem>>, vector<128x512xbf16>
    %cst_26 = arith.constant dense<0.000000e+00> : vector<8x512xf32>
    %59 = tpu.matmul %57, %58, %cst_26 {dimension_numbers = #tpu.dot_dimension_numbers<[1], [0], [0], [1], [0, 0, 1, 1], [], []>} : vector<8x128xbf16>, vector<128x512xbf16>, vector<8x512xf32> -> vector<8x512xf32>
    %60 = arith.addf %56, %59 : vector<8x512xf32>
    %61 = vector.extract_strided_slice %60 {offsets = [0, 0], sizes = [8, 384], strides = [1, 1]} : vector<8x512xf32> to vector<8x384xf32>
    %62 = arith.negf %61 : vector<8x384xf32>
    %63 = math.exp %62 : vector<8x384xf32>
    %cst_27 = arith.constant 1.000000e+00 : f32
    %64 = vector.broadcast %cst_27 : f32 to vector<8x384xf32>
    %65 = arith.addf %64, %63 : vector<8x384xf32>
    %66 = arith.divf %64, %65 : vector<8x384xf32>
    %67 = vector.extract_strided_slice %60 {offsets = [0, 384], sizes = [8, 128], strides = [1, 1]} : vector<8x512xf32> to vector<8x128xf32>
    %68 = math.tanh %67 : vector<8x128xf32>
    %69 = vector.extract_strided_slice %66 {offsets = [0, 128], sizes = [8, 128], strides = [1, 1]} : vector<8x384xf32> to vector<8x128xf32>
    %70 = arith.mulf %69, %48 : vector<8x128xf32>
    %71 = vector.extract_strided_slice %66 {offsets = [0, 0], sizes = [8, 128], strides = [1, 1]} : vector<8x384xf32> to vector<8x128xf32>
    %72 = arith.mulf %71, %68 : vector<8x128xf32>
    %73 = arith.addf %70, %72 : vector<8x128xf32>
    %74 = vector.extract_strided_slice %66 {offsets = [0, 256], sizes = [8, 128], strides = [1, 1]} : vector<8x384xf32> to vector<8x128xf32>
    %75 = math.tanh %73 : vector<8x128xf32>
    %76 = arith.mulf %74, %75 : vector<8x128xf32>
    %c2_28 = arith.constant 2 : index
    %c0_29 = arith.constant 0 : index
    %c0_30 = arith.constant 0 : index
    %77 = vector.load %arg4[%c2_28, %c0_29, %c0_30] : memref<8x8x128xf32, #tpu.memory_space<vmem>>, vector<1x8x128xf32>
    %78 = vector.shape_cast %77 : vector<1x8x128xf32> to vector<8x128xf32>
    %79 = vector.shape_cast %76 : vector<8x128xf32> to vector<1x8x128xf32>
    tpu.vector_store %arg4[%c2_28, %c0_29, %c0_30], %79 {strides = array<i32>} : memref<8x8x128xf32, #tpu.memory_space<vmem>>, vector<1x8x128xf32>,
    %c3 = arith.constant 3 : index
    %c0_31 = arith.constant 0 : index
    %c0_32 = arith.constant 0 : index
    %80 = vector.load %arg2[%c3, %c0_31, %c0_32] : memref<8x8x512xf32, #tpu.memory_space<vmem>>, vector<1x8x512xf32>
    %81 = vector.shape_cast %80 : vector<1x8x512xf32> to vector<8x512xf32>
    %82 = arith.truncf %76 : vector<8x128xf32> to vector<8x128xbf16>
    %c0_33 = arith.constant 0 : index
    %c0_34 = arith.constant 0 : index
    %83 = vector.load %arg3[%c0_33, %c0_34] : memref<128x512xbf16, #tpu.memory_space<vmem>>, vector<128x512xbf16>
    %cst_35 = arith.constant dense<0.000000e+00> : vector<8x512xf32>
    %84 = tpu.matmul %82, %83, %cst_35 {dimension_numbers = #tpu.dot_dimension_numbers<[1], [0], [0], [1], [0, 0, 1, 1], [], []>} : vector<8x128xbf16>, vector<128x512xbf16>, vector<8x512xf32> -> vector<8x512xf32>
    %85 = arith.addf %81, %84 : vector<8x512xf32>
    %86 = vector.extract_strided_slice %85 {offsets = [0, 0], sizes = [8, 384], strides = [1, 1]} : vector<8x512xf32> to vector<8x384xf32>
    %87 = arith.negf %86 : vector<8x384xf32>
    %88 = math.exp %87 : vector<8x384xf32>
    %cst_36 = arith.constant 1.000000e+00 : f32
    %89 = vector.broadcast %cst_36 : f32 to vector<8x384xf32>
    %90 = arith.addf %89, %88 : vector<8x384xf32>
    %91 = arith.divf %89, %90 : vector<8x384xf32>
    %92 = vector.extract_strided_slice %85 {offsets = [0, 384], sizes = [8, 128], strides = [1, 1]} : vector<8x512xf32> to vector<8x128xf32>
    %93 = math.tanh %92 : vector<8x128xf32>
    %94 = vector.extract_strided_slice %91 {offsets = [0, 128], sizes = [8, 128], strides = [1, 1]} : vector<8x384xf32> to vector<8x128xf32>
    %95 = arith.mulf %94, %73 : vector<8x128xf32>
    %96 = vector.extract_strided_slice %91 {offsets = [0, 0], sizes = [8, 128], strides = [1, 1]} : vector<8x384xf32> to vector<8x128xf32>
    %97 = arith.mulf %96, %93 : vector<8x128xf32>
    %98 = arith.addf %95, %97 : vector<8x128xf32>
    %99 = vector.extract_strided_slice %91 {offsets = [0, 256], sizes = [8, 128], strides = [1, 1]} : vector<8x384xf32> to vector<8x128xf32>
    %100 = math.tanh %98 : vector<8x128xf32>
    %101 = arith.mulf %99, %100 : vector<8x128xf32>
    %c3_37 = arith.constant 3 : index
    %c0_38 = arith.constant 0 : index
    %c0_39 = arith.constant 0 : index
    %102 = vector.load %arg4[%c3_37, %c0_38, %c0_39] : memref<8x8x128xf32, #tpu.memory_space<vmem>>, vector<1x8x128xf32>
    %103 = vector.shape_cast %102 : vector<1x8x128xf32> to vector<8x128xf32>
    %104 = vector.shape_cast %101 : vector<8x128xf32> to vector<1x8x128xf32>
    tpu.vector_store %arg4[%c3_37, %c0_38, %c0_39], %104 {strides = array<i32>} : memref<8x8x128xf32, #tpu.memory_space<vmem>>, vector<1x8x128xf32>,
    %c4 = arith.constant 4 : index
    %c0_40 = arith.constant 0 : index
    %c0_41 = arith.constant 0 : index
    %105 = vector.load %arg2[%c4, %c0_40, %c0_41] : memref<8x8x512xf32, #tpu.memory_space<vmem>>, vector<1x8x512xf32>
    %106 = vector.shape_cast %105 : vector<1x8x512xf32> to vector<8x512xf32>
    %107 = arith.truncf %101 : vector<8x128xf32> to vector<8x128xbf16>
    %c0_42 = arith.constant 0 : index
    %c0_43 = arith.constant 0 : index
    %108 = vector.load %arg3[%c0_42, %c0_43] : memref<128x512xbf16, #tpu.memory_space<vmem>>, vector<128x512xbf16>
    %cst_44 = arith.constant dense<0.000000e+00> : vector<8x512xf32>
    %109 = tpu.matmul %107, %108, %cst_44 {dimension_numbers = #tpu.dot_dimension_numbers<[1], [0], [0], [1], [0, 0, 1, 1], [], []>} : vector<8x128xbf16>, vector<128x512xbf16>, vector<8x512xf32> -> vector<8x512xf32>
    %110 = arith.addf %106, %109 : vector<8x512xf32>
    %111 = vector.extract_strided_slice %110 {offsets = [0, 0], sizes = [8, 384], strides = [1, 1]} : vector<8x512xf32> to vector<8x384xf32>
    %112 = arith.negf %111 : vector<8x384xf32>
    %113 = math.exp %112 : vector<8x384xf32>
    %cst_45 = arith.constant 1.000000e+00 : f32
    %114 = vector.broadcast %cst_45 : f32 to vector<8x384xf32>
    %115 = arith.addf %114, %113 : vector<8x384xf32>
    %116 = arith.divf %114, %115 : vector<8x384xf32>
    %117 = vector.extract_strided_slice %110 {offsets = [0, 384], sizes = [8, 128], strides = [1, 1]} : vector<8x512xf32> to vector<8x128xf32>
    %118 = math.tanh %117 : vector<8x128xf32>
    %119 = vector.extract_strided_slice %116 {offsets = [0, 128], sizes = [8, 128], strides = [1, 1]} : vector<8x384xf32> to vector<8x128xf32>
    %120 = arith.mulf %119, %98 : vector<8x128xf32>
    %121 = vector.extract_strided_slice %116 {offsets = [0, 0], sizes = [8, 128], strides = [1, 1]} : vector<8x384xf32> to vector<8x128xf32>
    %122 = arith.mulf %121, %118 : vector<8x128xf32>
    %123 = arith.addf %120, %122 : vector<8x128xf32>
    %124 = vector.extract_strided_slice %116 {offsets = [0, 256], sizes = [8, 128], strides = [1, 1]} : vector<8x384xf32> to vector<8x128xf32>
    %125 = math.tanh %123 : vector<8x128xf32>
    %126 = arith.mulf %124, %125 : vector<8x128xf32>
    %c4_46 = arith.constant 4 : index
    %c0_47 = arith.constant 0 : index
    %c0_48 = arith.constant 0 : index
    %127 = vector.load %arg4[%c4_46, %c0_47, %c0_48] : memref<8x8x128xf32, #tpu.memory_space<vmem>>, vector<1x8x128xf32>
    %128 = vector.shape_cast %127 : vector<1x8x128xf32> to vector<8x128xf32>
    %129 = vector.shape_cast %126 : vector<8x128xf32> to vector<1x8x128xf32>
    tpu.vector_store %arg4[%c4_46, %c0_47, %c0_48], %129 {strides = array<i32>} : memref<8x8x128xf32, #tpu.memory_space<vmem>>, vector<1x8x128xf32>,
    %c5 = arith.constant 5 : index
    %c0_49 = arith.constant 0 : index
    %c0_50 = arith.constant 0 : index
    %130 = vector.load %arg2[%c5, %c0_49, %c0_50] : memref<8x8x512xf32, #tpu.memory_space<vmem>>, vector<1x8x512xf32>
    %131 = vector.shape_cast %130 : vector<1x8x512xf32> to vector<8x512xf32>
    %132 = arith.truncf %126 : vector<8x128xf32> to vector<8x128xbf16>
    %c0_51 = arith.constant 0 : index
    %c0_52 = arith.constant 0 : index
    %133 = vector.load %arg3[%c0_51, %c0_52] : memref<128x512xbf16, #tpu.memory_space<vmem>>, vector<128x512xbf16>
    %cst_53 = arith.constant dense<0.000000e+00> : vector<8x512xf32>
    %134 = tpu.matmul %132, %133, %cst_53 {dimension_numbers = #tpu.dot_dimension_numbers<[1], [0], [0], [1], [0, 0, 1, 1], [], []>} : vector<8x128xbf16>, vector<128x512xbf16>, vector<8x512xf32> -> vector<8x512xf32>
    %135 = arith.addf %131, %134 : vector<8x512xf32>
    %136 = vector.extract_strided_slice %135 {offsets = [0, 0], sizes = [8, 384], strides = [1, 1]} : vector<8x512xf32> to vector<8x384xf32>
    %137 = arith.negf %136 : vector<8x384xf32>
    %138 = math.exp %137 : vector<8x384xf32>
    %cst_54 = arith.constant 1.000000e+00 : f32
    %139 = vector.broadcast %cst_54 : f32 to vector<8x384xf32>
    %140 = arith.addf %139, %138 : vector<8x384xf32>
    %141 = arith.divf %139, %140 : vector<8x384xf32>
    %142 = vector.extract_strided_slice %135 {offsets = [0, 384], sizes = [8, 128], strides = [1, 1]} : vector<8x512xf32> to vector<8x128xf32>
    %143 = math.tanh %142 : vector<8x128xf32>
    %144 = vector.extract_strided_slice %141 {offsets = [0, 128], sizes = [8, 128], strides = [1, 1]} : vector<8x384xf32> to vector<8x128xf32>
    %145 = arith.mulf %144, %123 : vector<8x128xf32>
    %146 = vector.extract_strided_slice %141 {offsets = [0, 0], sizes = [8, 128], strides = [1, 1]} : vector<8x384xf32> to vector<8x128xf32>
    %147 = arith.mulf %146, %143 : vector<8x128xf32>
    %148 = arith.addf %145, %147 : vector<8x128xf32>
    %149 = vector.extract_strided_slice %141 {offsets = [0, 256], sizes = [8, 128], strides = [1, 1]} : vector<8x384xf32> to vector<8x128xf32>
    %150 = math.tanh %148 : vector<8x128xf32>
    %151 = arith.mulf %149, %150 : vector<8x128xf32>
    %c5_55 = arith.constant 5 : index
    %c0_56 = arith.constant 0 : index
    %c0_57 = arith.constant 0 : index
    %152 = vector.load %arg4[%c5_55, %c0_56, %c0_57] : memref<8x8x128xf32, #tpu.memory_space<vmem>>, vector<1x8x128xf32>
    %153 = vector.shape_cast %152 : vector<1x8x128xf32> to vector<8x128xf32>
    %154 = vector.shape_cast %151 : vector<8x128xf32> to vector<1x8x128xf32>
    tpu.vector_store %arg4[%c5_55, %c0_56, %c0_57], %154 {strides = array<i32>} : memref<8x8x128xf32, #tpu.memory_space<vmem>>, vector<1x8x128xf32>,
    %c6 = arith.constant 6 : index
    %c0_58 = arith.constant 0 : index
    %c0_59 = arith.constant 0 : index
    %155 = vector.load %arg2[%c6, %c0_58, %c0_59] : memref<8x8x512xf32, #tpu.memory_space<vmem>>, vector<1x8x512xf32>
    %156 = vector.shape_cast %155 : vector<1x8x512xf32> to vector<8x512xf32>
    %157 = arith.truncf %151 : vector<8x128xf32> to vector<8x128xbf16>
    %c0_60 = arith.constant 0 : index
    %c0_61 = arith.constant 0 : index
    %158 = vector.load %arg3[%c0_60, %c0_61] : memref<128x512xbf16, #tpu.memory_space<vmem>>, vector<128x512xbf16>
    %cst_62 = arith.constant dense<0.000000e+00> : vector<8x512xf32>
    %159 = tpu.matmul %157, %158, %cst_62 {dimension_numbers = #tpu.dot_dimension_numbers<[1], [0], [0], [1], [0, 0, 1, 1], [], []>} : vector<8x128xbf16>, vector<128x512xbf16>, vector<8x512xf32> -> vector<8x512xf32>
    %160 = arith.addf %156, %159 : vector<8x512xf32>
    %161 = vector.extract_strided_slice %160 {offsets = [0, 0], sizes = [8, 384], strides = [1, 1]} : vector<8x512xf32> to vector<8x384xf32>
    %162 = arith.negf %161 : vector<8x384xf32>
    %163 = math.exp %162 : vector<8x384xf32>
    %cst_63 = arith.constant 1.000000e+00 : f32
    %164 = vector.broadcast %cst_63 : f32 to vector<8x384xf32>
    %165 = arith.addf %164, %163 : vector<8x384xf32>
    %166 = arith.divf %164, %165 : vector<8x384xf32>
    %167 = vector.extract_strided_slice %160 {offsets = [0, 384], sizes = [8, 128], strides = [1, 1]} : vector<8x512xf32> to vector<8x128xf32>
    %168 = math.tanh %167 : vector<8x128xf32>
    %169 = vector.extract_strided_slice %166 {offsets = [0, 128], sizes = [8, 128], strides = [1, 1]} : vector<8x384xf32> to vector<8x128xf32>
    %170 = arith.mulf %169, %148 : vector<8x128xf32>
    %171 = vector.extract_strided_slice %166 {offsets = [0, 0], sizes = [8, 128], strides = [1, 1]} : vector<8x384xf32> to vector<8x128xf32>
    %172 = arith.mulf %171, %168 : vector<8x128xf32>
    %173 = arith.addf %170, %172 : vector<8x128xf32>
    %174 = vector.extract_strided_slice %166 {offsets = [0, 256], sizes = [8, 128], strides = [1, 1]} : vector<8x384xf32> to vector<8x128xf32>
    %175 = math.tanh %173 : vector<8x128xf32>
    %176 = arith.mulf %174, %175 : vector<8x128xf32>
    %c6_64 = arith.constant 6 : index
    %c0_65 = arith.constant 0 : index
    %c0_66 = arith.constant 0 : index
    %177 = vector.load %arg4[%c6_64, %c0_65, %c0_66] : memref<8x8x128xf32, #tpu.memory_space<vmem>>, vector<1x8x128xf32>
    %178 = vector.shape_cast %177 : vector<1x8x128xf32> to vector<8x128xf32>
    %179 = vector.shape_cast %176 : vector<8x128xf32> to vector<1x8x128xf32>
    tpu.vector_store %arg4[%c6_64, %c0_65, %c0_66], %179 {strides = array<i32>} : memref<8x8x128xf32, #tpu.memory_space<vmem>>, vector<1x8x128xf32>,
    %c7 = arith.constant 7 : index
    %c0_67 = arith.constant 0 : index
    %c0_68 = arith.constant 0 : index
    %180 = vector.load %arg2[%c7, %c0_67, %c0_68] : memref<8x8x512xf32, #tpu.memory_space<vmem>>, vector<1x8x512xf32>
    %181 = vector.shape_cast %180 : vector<1x8x512xf32> to vector<8x512xf32>
    %182 = arith.truncf %176 : vector<8x128xf32> to vector<8x128xbf16>
    %c0_69 = arith.constant 0 : index
    %c0_70 = arith.constant 0 : index
    %183 = vector.load %arg3[%c0_69, %c0_70] : memref<128x512xbf16, #tpu.memory_space<vmem>>, vector<128x512xbf16>
    %cst_71 = arith.constant dense<0.000000e+00> : vector<8x512xf32>
    %184 = tpu.matmul %182, %183, %cst_71 {dimension_numbers = #tpu.dot_dimension_numbers<[1], [0], [0], [1], [0, 0, 1, 1], [], []>} : vector<8x128xbf16>, vector<128x512xbf16>, vector<8x512xf32> -> vector<8x512xf32>
    %185 = arith.addf %181, %184 : vector<8x512xf32>
    %186 = vector.extract_strided_slice %185 {offsets = [0, 0], sizes = [8, 384], strides = [1, 1]} : vector<8x512xf32> to vector<8x384xf32>
    %187 = arith.negf %186 : vector<8x384xf32>
    %188 = math.exp %187 : vector<8x384xf32>
    %cst_72 = arith.constant 1.000000e+00 : f32
    %189 = vector.broadcast %cst_72 : f32 to vector<8x384xf32>
    %190 = arith.addf %189, %188 : vector<8x384xf32>
    %191 = arith.divf %189, %190 : vector<8x384xf32>
    %192 = vector.extract_strided_slice %185 {offsets = [0, 384], sizes = [8, 128], strides = [1, 1]} : vector<8x512xf32> to vector<8x128xf32>
    %193 = math.tanh %192 : vector<8x128xf32>
    %194 = vector.extract_strided_slice %191 {offsets = [0, 128], sizes = [8, 128], strides = [1, 1]} : vector<8x384xf32> to vector<8x128xf32>
    %195 = arith.mulf %194, %173 : vector<8x128xf32>
    %196 = vector.extract_strided_slice %191 {offsets = [0, 0], sizes = [8, 128], strides = [1, 1]} : vector<8x384xf32> to vector<8x128xf32>
    %197 = arith.mulf %196, %193 : vector<8x128xf32>
    %198 = arith.addf %195, %197 : vector<8x128xf32>
    %199 = vector.extract_strided_slice %191 {offsets = [0, 256], sizes = [8, 128], strides = [1, 1]} : vector<8x384xf32> to vector<8x128xf32>
    %200 = math.tanh %198 : vector<8x128xf32>
    %201 = arith.mulf %199, %200 : vector<8x128xf32>
    %c7_73 = arith.constant 7 : index
    %c0_74 = arith.constant 0 : index
    %c0_75 = arith.constant 0 : index
    %202 = vector.load %arg4[%c7_73, %c0_74, %c0_75] : memref<8x8x128xf32, #tpu.memory_space<vmem>>, vector<1x8x128xf32>
    %203 = vector.shape_cast %202 : vector<1x8x128xf32> to vector<8x128xf32>
    %204 = vector.shape_cast %201 : vector<8x128xf32> to vector<1x8x128xf32>
    tpu.vector_store %arg4[%c7_73, %c0_74, %c0_75], %204 {strides = array<i32>} : memref<8x8x128xf32, #tpu.memory_space<vmem>>, vector<1x8x128xf32>,
    %c0_76 = arith.constant 0 : index
    %c0_77 = arith.constant 0 : index
    %205 = vector.load %arg5[%c0_76, %c0_77] : memref<8x128xf32, #tpu.memory_space<vmem>>, vector<8x128xf32>
    tpu.vector_store %arg5[%c0_76, %c0_77], %201 {strides = array<i32>} : memref<8x128xf32, #tpu.memory_space<vmem>>, vector<8x128xf32>,
    %c0_78 = arith.constant 0 : index
    %c0_79 = arith.constant 0 : index
    %206 = vector.load %arg6[%c0_78, %c0_79] : memref<8x128xf32, #tpu.memory_space<vmem>>, vector<8x128xf32>
    tpu.vector_store %arg6[%c0_78, %c0_79], %198 {strides = array<i32>} : memref<8x128xf32, #tpu.memory_space<vmem>>, vector<8x128xf32>,
    return
  }
  func.func @transform_0(%arg0: i32, %arg1: i32) -> (i32, i32, i32) {
    %c0_i32 = arith.constant 0 : i32
    %c0_i32_0 = arith.constant 0 : i32
    return %arg1, %arg0, %c0_i32 : i32, i32, i32
  }
  func.func @transform_1(%arg0: i32, %arg1: i32) -> (i32, i32) {
    %c0_i32 = arith.constant 0 : i32
    %c0_i32_0 = arith.constant 0 : i32
    %c0_i32_1 = arith.constant 0 : i32
    return %c0_i32, %c0_i32_0 : i32, i32
  }
  func.func @transform_2(%arg0: i32, %arg1: i32) -> (i32, i32, i32) {
    %c0_i32 = arith.constant 0 : i32
    %c0_i32_0 = arith.constant 0 : i32
    return %arg1, %arg0, %c0_i32 : i32, i32, i32
  }
}

module attributes {stable_mosaic.version = 11 : i64} {
  func.func @_matmul_bias_kernel(%arg0: i32, %arg1: i32, %arg2: i32, %arg3: memref<64x128xf32, #tpu.memory_space<vmem>>, %arg4: memref<128x128xbf16, #tpu.memory_space<vmem>>, %arg5: memref<1x128xf32, #tpu.memory_space<vmem>>, %arg6: memref<64x128xf32, #tpu.memory_space<vmem>>, %arg7: memref<64x128xf32, #tpu.memory_space<vmem>>) attributes {dimension_semantics = [#tpu.dimension_semantics<parallel>, #tpu.dimension_semantics<parallel>, #tpu.dimension_semantics<arbitrary>], iteration_bounds = array<i64: 1, 1, 1>, scalar_prefetch = 0 : i64, scratch_operands = 1 : i64, tpu.core_type = #tpu.core_type<tc>, window_params = [{transform_indices = @transform_0, window_bounds = array<i64: 64, 128>}, {transform_indices = @transform_1, window_bounds = array<i64: 128, 128>}, {transform_indices = @transform_2, window_bounds = array<i64: 1, 128>}, {transform_indices = @transform_3, window_bounds = array<i64: 64, 128>}]} {
    %c0_i32 = arith.constant 0 : i32
    %0 = arith.cmpi eq, %arg2, %c0_i32 : i32
    %1 = arith.extui %0 : i1 to i32
    %c0_i32_0 = arith.constant 0 : i32
    %2 = arith.cmpi ne, %1, %c0_i32_0 : i32
    scf.if %2 {
      %cst_10 = arith.constant 0.000000e+00 : f32
      %13 = vector.broadcast %cst_10 : f32 to vector<64x128xf32>
      %c0_11 = arith.constant 0 : index
      %c0_12 = arith.constant 0 : index
      %14 = vector.load %arg7[%c0_11, %c0_12] : memref<64x128xf32, #tpu.memory_space<vmem>>, vector<64x128xf32>
      tpu.vector_store %arg7[%c0_11, %c0_12], %13 {strides = array<i32>} : memref<64x128xf32, #tpu.memory_space<vmem>>, vector<64x128xf32>,
    } else {
    }
    %c0 = arith.constant 0 : index
    %c0_1 = arith.constant 0 : index
    %3 = vector.load %arg3[%c0, %c0_1] : memref<64x128xf32, #tpu.memory_space<vmem>>, vector<64x128xf32>
    %4 = arith.truncf %3 : vector<64x128xf32> to vector<64x128xbf16>
    %c0_2 = arith.constant 0 : index
    %c0_3 = arith.constant 0 : index
    %5 = vector.load %arg7[%c0_2, %c0_3] : memref<64x128xf32, #tpu.memory_space<vmem>>, vector<64x128xf32>
    %c0_4 = arith.constant 0 : index
    %c0_5 = arith.constant 0 : index
    %6 = vector.load %arg4[%c0_4, %c0_5] : memref<128x128xbf16, #tpu.memory_space<vmem>>, vector<128x128xbf16>
    %cst = arith.constant dense<0.000000e+00> : vector<64x128xf32>
    %7 = tpu.matmul %4, %6, %cst {dimension_numbers = #tpu.dot_dimension_numbers<[1], [0], [0], [1], [0, 0, 1, 1], [], []>} : vector<64x128xbf16>, vector<128x128xbf16>, vector<64x128xf32> -> vector<64x128xf32>
    %8 = arith.addf %5, %7 : vector<64x128xf32>
    %c0_6 = arith.constant 0 : index
    %c0_7 = arith.constant 0 : index
    %9 = vector.load %arg7[%c0_6, %c0_7] : memref<64x128xf32, #tpu.memory_space<vmem>>, vector<64x128xf32>
    tpu.vector_store %arg7[%c0_6, %c0_7], %8 {strides = array<i32>} : memref<64x128xf32, #tpu.memory_space<vmem>>, vector<64x128xf32>,
    %c0_i32_8 = arith.constant 0 : i32
    %10 = arith.cmpi eq, %arg2, %c0_i32_8 : i32
    %11 = arith.extui %10 : i1 to i32
    %c0_i32_9 = arith.constant 0 : i32
    %12 = arith.cmpi ne, %11, %c0_i32_9 : i32
    scf.if %12 {
      %c0_10 = arith.constant 0 : index
      %c0_11 = arith.constant 0 : index
      %13 = vector.load %arg7[%c0_10, %c0_11] : memref<64x128xf32, #tpu.memory_space<vmem>>, vector<64x128xf32>
      %c0_12 = arith.constant 0 : index
      %c0_13 = arith.constant 0 : index
      %14 = vector.load %arg5[%c0_12, %c0_13] : memref<1x128xf32, #tpu.memory_space<vmem>>, vector<1x128xf32>
      %15 = vector.broadcast %14 : vector<1x128xf32> to vector<64x128xf32>
      %16 = arith.addf %13, %15 : vector<64x128xf32>
      %c0_14 = arith.constant 0 : index
      %c0_15 = arith.constant 0 : index
      %17 = vector.load %arg6[%c0_14, %c0_15] : memref<64x128xf32, #tpu.memory_space<vmem>>, vector<64x128xf32>
      tpu.vector_store %arg6[%c0_14, %c0_15], %16 {strides = array<i32>} : memref<64x128xf32, #tpu.memory_space<vmem>>, vector<64x128xf32>,
    } else {
    }
    return
  }
  func.func @transform_0(%arg0: i32, %arg1: i32, %arg2: i32) -> (i32, i32) {
    %c0_i32 = arith.constant 0 : i32
    return %arg0, %arg2 : i32, i32
  }
  func.func @transform_1(%arg0: i32, %arg1: i32, %arg2: i32) -> (i32, i32) {
    %c0_i32 = arith.constant 0 : i32
    return %arg2, %arg1 : i32, i32
  }
  func.func @transform_2(%arg0: i32, %arg1: i32, %arg2: i32) -> (i32, i32) {
    %c0_i32 = arith.constant 0 : i32
    %c0_i32_0 = arith.constant 0 : i32
    return %c0_i32, %arg1 : i32, i32
  }
  func.func @transform_3(%arg0: i32, %arg1: i32, %arg2: i32) -> (i32, i32) {
    %c0_i32 = arith.constant 0 : i32
    return %arg0, %arg1 : i32, i32
  }
}

</mosaic_0001>

<bundles_post_ra>
// kernel: lstm_language_model_forward.9
= control target key start
LH: loop header
LB: loop body
LE: loop exit
PB: predicated region body
PF: predicated region fallthrough
CT: control target
= control target key end

     0   :  { %s394_s1 = inlined_call_operand.vmem [shape: bf16[128,128], index: 1, kind: input, shape index: {}]   ;;  %s395_s0 = inlined_call_operand.vmem [shape: f32[64,128], index: 0, kind: input, shape index: {}]   ;;  %s396_s2 = inlined_call_operand.vmem [shape: f32[1,128], index: 2, kind: input, shape index: {}]   ;;  %s397_s3 = inlined_call_operand.vmem [shape: f32[64,128], index: 3, kind: output, shape index: {}]  }
   0x1   :  { %v291_v0 = vld [vmem:[%s394_s1] sm:$0xff]   ;;  %v292_v1 = vld [vmem:[%s394_s1 + $0x8] sm:$0xff]   ;;  %v293_v2 = vld [vmem:[%s394_s1 + $0x10] sm:$0xff]  }
   0x2   :  { %251 = vmatprep.subr.bf16.mxu0 %v291_v0  ;;  %275 = vmatprep.subr.bf16.mxu1 %v291_v0  ;;  %v294_v3 = vld [vmem:[%s394_s1 + $0x18] sm:$0xff]   ;;  %v27_v4 = vld [vmem:[%s395_s0] sm:$0xff]  ;;  %v28_v5 = vld [vmem:[%s395_s0 + $0x8] sm:$0xff] }
   0x3   :  { %252 = vmatpush3.bf16.msra.mxu0 %v291_v0  ;;  %283 = vmatpush3.bf16.msra.mxu1 %v291_v0  ;;  %v31_v6 = vld [vmem:[%s395_s0 + $0x20] sm:$0xff]  ;;  %v35_v7 = vpack.c.bf16 %v28_v5, %v27_v4  ;;  %v32_v8 = vld [vmem:[%s395_s0 + $0x28] sm:$0xff]  ;;  %v297_v12 = vld [vmem:[%s394_s1 + $0x30] sm:$0xff]  }
   0x4   :  { %253 = vmatprep.subr.bf16.mxu0 %v292_v1  ;;  %276 = vmatprep.subr.bf16.mxu1 %v292_v1  ;;  %v37_v9 = vpack.c.bf16 %v32_v8, %v31_v6  ;;  %v295_v10 = vld [vmem:[%s394_s1 + $0x20] sm:$0xff]   ;;  %v296_v11 = vld [vmem:[%s394_s1 + $0x28] sm:$0xff]   ;;  %v298_v13 = vld [vmem:[%s394_s1 + $0x38] sm:$0xff]  }
   0x5   :  { %267 = vmatprep.mubr.bf16.mxu0 %v35_v7  ;;  %v29_v14 = vld [vmem:[%s395_s0 + $0x10] sm:$0xff]  ;;  %v30_v15 = vld [vmem:[%s395_s0 + $0x18] sm:$0xff]  ;;  %v238_v20 = vld [vmem:[%s396_s2] ss:$0 sm:$0xff] }
   0x6   :  { %271 = vmatprep.mubr.bf16.mxu1 %v37_v9  ;;  %v33_v16 = vld [vmem:[%s395_s0 + $0x30] sm:$0xff]  ;;  %v34_v17 = vld [vmem:[%s395_s0 + $0x38] sm:$0xff]  ;;  %v36_v18 = vpack.c.bf16 %v30_v15, %v29_v14 }
   0x7   :  { %254 = vmatpush3.bf16.msra.mxu0 %v292_v1  ;;  %284 = vmatpush3.bf16.msra.mxu1 %v292_v1  ;;  %v38_v19 = vpack.c.bf16 %v34_v17, %v33_v16 }
   0x8   :  { %255 = vmatprep.subr.bf16.mxu0 %v293_v2  ;;  %277 = vmatprep.subr.bf16.mxu1 %v293_v2 }
   0xb   :  { %256 = vmatpush3.bf16.msra.mxu0 %v293_v2  ;;  %285 = vmatpush3.bf16.msra.mxu1 %v293_v2 }
   0xc   :  { %257 = vmatprep.subr.bf16.mxu0 %v294_v3  ;;  %278 = vmatprep.subr.bf16.mxu1 %v294_v3 }
   0xf   :  { %258 = vmatpush3.bf16.msra.mxu0 %v294_v3  ;;  %286 = vmatpush3.bf16.msra.mxu1 %v294_v3 }
  0x10   :  { %259 = vmatprep.subr.bf16.mxu0 %v295_v10  ;;  %279 = vmatprep.subr.bf16.mxu1 %v295_v10 }
  0x13   :  { %260 = vmatpush3.bf16.msra.mxu0 %v295_v10  ;;  %287 = vmatpush3.bf16.msra.mxu1 %v295_v10 }
  0x14   :  { %261 = vmatprep.subr.bf16.mxu0 %v296_v11  ;;  %280 = vmatprep.subr.bf16.mxu1 %v296_v11 }
  0x17   :  { %262 = vmatpush3.bf16.msra.mxu0 %v296_v11  ;;  %288 = vmatpush3.bf16.msra.mxu1 %v296_v11 }
  0x18   :  { %263 = vmatprep.subr.bf16.mxu0 %v297_v12  ;;  %281 = vmatprep.subr.bf16.mxu1 %v297_v12 }
  0x1b   :  { %264 = vmatpush3.bf16.msra.mxu0 %v297_v12  ;;  %289 = vmatpush3.bf16.msra.mxu1 %v297_v12 }
  0x1c   :  { %265 = vmatprep.subr.bf16.mxu0 %v298_v13  ;;  %282 = vmatprep.subr.bf16.mxu1 %v298_v13 }
  0x1f   :  { %266 = vmatpush3.bf16.msra.mxu0 %v298_v13  ;;  %290 = vmatpush3.bf16.msra.mxu1 %v298_v13 }
  0x22   :  { %268 = vmatmul.mubr.bf16.vlgmr.msra.gmra.mrb[0].mxu0 %v36_v18  ;;  %272 = vmatmul.mubr.bf16.vlgmr.msra.gmra.mrb[0].mxu1 %v38_v19 }
  0xf5   :  { %v269_v21 = vpop.f32.mrb[0].mxu0  ;;  %v273_v22 = vpop.f32.mrb[0].mxu1 }
  0xf6   :  { %v212_v23 = vadd.f32 %v269_v21, %v238_v20  ;;  %v216_v24 = vadd.f32 %v273_v22, %v238_v20  ;;  %v145_v25 = vpop.f32.mrb[1].mxu0  ;;  %v161_v26 = vpop.f32.mrb[1].mxu1 }
  0xf7   :  { %v210_v27 = vadd.f32 %v238_v20, %v145_v25  ;;  %v214_v28 = vadd.f32 %v238_v20, %v161_v26  ;;  %v270_v29 = vpop.f32.mrb[2].mxu0  ;;  %v274_v30 = vpop.f32.mrb[2].mxu1 }
  0xf8   :  { %220 = vst [vmem:[%s397_s3 + $0x10] sm:$0xff] %v212_v23  ;;  %224 = vst [vmem:[%s397_s3 + $0x30] sm:$0xff] %v216_v24  ;;  %v213_v31 = vadd.f32 %v270_v29, %v238_v20  ;;  %v217_v32 = vadd.f32 %v274_v30, %v238_v20  ;;  %v148_v33 = vpop.f32.mrb[3].mxu0  ;;  %v164_v34 = vpop.f32.mrb[3].mxu1 }
  0xf9   :  { %218 = vst [vmem:[%s397_s3] sm:$0xff] %v210_v27  ;;  %222 = vst [vmem:[%s397_s3 + $0x20] sm:$0xff] %v214_v28  ;;  %v211_v35 = vadd.f32 %v238_v20, %v148_v33  ;;  %v215_v36 = vadd.f32 %v238_v20, %v164_v34 }
  0xfa   :  { %221 = vst [vmem:[%s397_s3 + $0x18] sm:$0xff] %v213_v31  ;;  %225 = vst [vmem:[%s397_s3 + $0x38] sm:$0xff] %v217_v32 }
  0xfb   :  { %219 = vst [vmem:[%s397_s3 + $0x8] sm:$0xff] %v211_v35  ;;  %223 = vst [vmem:[%s397_s3 + $0x28] sm:$0xff] %v215_v36 }

// kernel: lstm_language_model_forward.5
= control target key start
LH: loop header
LB: loop body
LE: loop exit
PB: predicated region body
PF: predicated region fallthrough
CT: control target
= control target key end

     0   :  { %v703_v1 = vmov 0   ;;  %v534_v45 = vlaneseq  ;;  %s991_s1 = inlined_call_operand.vmem [shape: bf16[128,512], index: 1, kind: input, shape index: {}]   ;;  %s992_s0 = inlined_call_operand.vmem [shape: f32[64,128], index: 0, kind: input, shape index: {}]   ;;  %s993_s2 = inlined_call_operand.vmem [shape: f32[1,512], index: 2, kind: input, shape index: {}]   ;;  %s994_s3 = inlined_call_operand.vmem [shape: f32[64,512], index: 3, kind: output, shape index: {}]  }
   0x1   :  { %v655_v0 = vld [vmem:[%s991_s1 + $0x4] ss:$16 sps:$4 sm:$0xff]   ;;  %319 = vmatprep.mubr.bf16.mxu0 %v703_v1  ;;  %392 = vmatprep.mubr.bf16.mxu1 %v703_v1  ;;  %v657_v2 = vld [vmem:[%s991_s1 + $0xc] ss:$16 sps:$4 sm:$0xff]   ;;  %v659_v3 = vld [vmem:[%s991_s1] ss:$16 sps:$4 sm:$0xff]  }
   0x2   :  { %287 = vmatprep.subr.bf16.mxu0 %v655_v0  ;;  %v660_v4 = vld [vmem:[%s991_s1 + $0x8] ss:$16 sps:$4 sm:$0xff]   ;;  %360 = vmatprep.subr.bf16.mxu1 %v657_v2  ;;  %v661_v5 = vld [vmem:[%s991_s1 + $0x24] ss:$16 sps:$4 sm:$0xff]   ;;  %v663_v6 = vld [vmem:[%s991_s1 + $0x2c] ss:$16 sps:$4 sm:$0xff]  }
   0x3   :  { %288 = vmatpush1.bf16.msra.mxu0 %v659_v3  ;;  %361 = vmatpush1.bf16.msra.mxu1 %v660_v4  ;;  %v665_v7 = vld [vmem:[%s991_s1 + $0x20] ss:$16 sps:$4 sm:$0xff]   ;;  %v666_v8 = vld [vmem:[%s991_s1 + $0x28] ss:$16 sps:$4 sm:$0xff]   ;;  %v667_v9 = vld [vmem:[%s991_s1 + $0x44] ss:$16 sps:$4 sm:$0xff]  }
   0x4   :  { %289 = vmatprep.subr.bf16.mxu0 %v661_v5  ;;  %362 = vmatprep.subr.bf16.mxu1 %v663_v6  ;;  %v669_v10 = vld [vmem:[%s991_s1 + $0x4c] ss:$16 sps:$4 sm:$0xff]   ;;  %v671_v11 = vld [vmem:[%s991_s1 + $0x40] ss:$16 sps:$4 sm:$0xff]   ;;  %v672_v12 = vld [vmem:[%s991_s1 + $0x48] ss:$16 sps:$4 sm:$0xff]  }
   0x5   :  { %v673_v13 = vld [vmem:[%s991_s1 + $0x64] ss:$16 sps:$4 sm:$0xff]   ;;  %v675_v14 = vld [vmem:[%s991_s1 + $0x6c] ss:$16 sps:$4 sm:$0xff]   ;;  %v677_v15 = vld [vmem:[%s991_s1 + $0x60] ss:$16 sps:$4 sm:$0xff]  }
   0x6   :  { %v678_v16 = vld [vmem:[%s991_s1 + $0x68] ss:$16 sps:$4 sm:$0xff]   ;;  %v679_v17 = vld [vmem:[%s991_s1 + $0x84] ss:$16 sps:$4 sm:$0xff]   ;;  %v681_v18 = vld [vmem:[%s991_s1 + $0x8c] ss:$16 sps:$4 sm:$0xff]  }
   0x7   :  { %290 = vmatpush1.bf16.msra.mxu0 %v665_v7  ;;  %363 = vmatpush1.bf16.msra.mxu1 %v666_v8  ;;  %v683_v19 = vld [vmem:[%s991_s1 + $0x80] ss:$16 sps:$4 sm:$0xff]   ;;  %v684_v20 = vld [vmem:[%s991_s1 + $0x88] ss:$16 sps:$4 sm:$0xff]   ;;  %v685_v21 = vld [vmem:[%s991_s1 + $0xa4] ss:$16 sps:$4 sm:$0xff]  }
   0x8   :  { %291 = vmatprep.subr.bf16.mxu0 %v667_v9  ;;  %364 = vmatprep.subr.bf16.mxu1 %v669_v10  ;;  %v687_v22 = vld [vmem:[%s991_s1 + $0xac] ss:$16 sps:$4 sm:$0xff]   ;;  %v689_v23 = vld [vmem:[%s991_s1 + $0xa0] ss:$16 sps:$4 sm:$0xff]   ;;  %v690_v24 = vld [vmem:[%s991_s1 + $0xa8] ss:$16 sps:$4 sm:$0xff]  }
   0x9   :  { %v691_v25 = vld [vmem:[%s991_s1 + $0xc4] ss:$16 sps:$4 sm:$0xff]   ;;  %v693_v26 = vld [vmem:[%s991_s1 + $0xcc] ss:$16 sps:$4 sm:$0xff]   ;;  %v695_v27 = vld [vmem:[%s991_s1 + $0xc0] ss:$16 sps:$4 sm:$0xff]  }
   0xa   :  { %v696_v28 = vld [vmem:[%s991_s1 + $0xc8] ss:$16 sps:$4 sm:$0xff]   ;;  %v697_v29 = vld [vmem:[%s991_s1 + $0xe4] ss:$16 sps:$4 sm:$0xff]   ;;  %v699_v30 = vld [vmem:[%s991_s1 + $0xec] ss:$16 sps:$4 sm:$0xff]  }
   0xb   :  { %292 = vmatpush1.bf16.msra.mxu0 %v671_v11  ;;  %365 = vmatpush1.bf16.msra.mxu1 %v672_v12  ;;  %v701_v31 = vld [vmem:[%s991_s1 + $0xe0] ss:$16 sps:$4 sm:$0xff]   ;;  %v702_v32 = vld [vmem:[%s991_s1 + $0xe8] ss:$16 sps:$4 sm:$0xff]   ;;  %v535_v46 = vshrl.u32 %v534_v45, 7 }
   0xc   :  { %293 = vmatprep.subr.bf16.mxu0 %v673_v13  ;;  %366 = vmatprep.subr.bf16.mxu1 %v675_v14  ;;  %v51_v33 = vld [vmem:[%s992_s0] sm:$0xff]  ;;  %v52_v34 = vld [vmem:[%s992_s0 + $0x8] sm:$0xff]  ;;  %v53_v36 = vld [vmem:[%s992_s0 + $0x10] sm:$0xff] }
   0xd   :  { %v59_v35 = vpack.c.bf16 %v52_v34, %v51_v33  ;;  %v54_v37 = vld [vmem:[%s992_s0 + $0x18] sm:$0xff]  ;;  %v55_v39 = vld [vmem:[%s992_s0 + $0x20] sm:$0xff]  ;;  %v56_v40 = vld [vmem:[%s992_s0 + $0x28] sm:$0xff]  ;;  %v536_v47 = vsub.s32 0, %v535_v46  ;;  %v544_v48 = vsub.s32 2, %v535_v46  ;;  %v540_v50 = vsub.s32 1, %v535_v46 }
   0xe   :  { %v60_v38 = vpack.c.bf16 %v54_v37, %v53_v36  ;;  %v61_v41 = vpack.c.bf16 %v56_v40, %v55_v39  ;;  %v57_v42 = vld [vmem:[%s992_s0 + $0x30] sm:$0xff]  ;;  %v58_v43 = vld [vmem:[%s992_s0 + $0x38] sm:$0xff]  ;;  %v532_v49 = vld [vmem:[%s993_s2] sm:$0xf]  ;;  %v548_v51 = vsub.s32 3, %v535_v46 }
   0xf   :  { %294 = vmatpush1.bf16.msra.mxu0 %v677_v15  ;;  %367 = vmatpush1.bf16.msra.mxu1 %v678_v16  ;;  %v62_v44 = vpack.c.bf16 %v58_v43, %v57_v42  ;;  %v855_v52 = vrot.slane %v532_v49, %v536_v47  ;;  %v857_v53 = vrot.slane %v532_v49, %v544_v48 }
  0x10   :  { %295 = vmatprep.subr.bf16.mxu0 %v679_v17  ;;  %368 = vmatprep.subr.bf16.mxu1 %v681_v18  ;;  %v859_v54 = vrot.slane %v532_v49, %v540_v50  ;;  %v861_v55 = vrot.slane %v532_v49, %v548_v51 }
  0x13   :  { %296 = vmatpush1.bf16.msra.mxu0 %v683_v19  ;;  %369 = vmatpush1.bf16.msra.mxu1 %v684_v20 }
  0x14   :  { %297 = vmatprep.subr.bf16.mxu0 %v685_v21  ;;  %370 = vmatprep.subr.bf16.mxu1 %v687_v22 }
  0x17   :  { %298 = vmatpush1.bf16.msra.mxu0 %v689_v23  ;;  %371 = vmatpush1.bf16.msra.mxu1 %v690_v24 }
  0x18   :  { %299 = vmatprep.subr.bf16.mxu0 %v691_v25  ;;  %372 = vmatprep.subr.bf16.mxu1 %v693_v26 }
  0x1b   :  { %300 = vmatpush1.bf16.msra.mxu0 %v695_v27  ;;  %373 = vmatpush1.bf16.msra.mxu1 %v696_v28 }
  0x1c   :  { %301 = vmatprep.subr.bf16.mxu0 %v697_v29  ;;  %374 = vmatprep.subr.bf16.mxu1 %v699_v30 }
  0x1f   :  { %302 = vmatpush1.bf16.msra.mxu0 %v701_v31  ;;  %375 = vmatpush1.bf16.msra.mxu1 %v702_v32 }
  0x22   :  { %320 = vmatmul.mubr.bf16.vlgmr.msra.gmra.mrb[0].mxu0 %v59_v35  ;;  %393 = vmatmul.mubr.bf16.vlgmr.msra.gmra.mrb[0].mxu1 %v59_v35 }
  0x23   :  { %329 = vmatprep.mubr.bf16.mxu0 %v703_v1  ;;  %402 = vmatprep.mubr.bf16.mxu1 %v703_v1 }
  0x2a   :  { %330 = vmatmul.mubr.bf16.gmra.mrb[4].mxu0 %v60_v38  ;;  %403 = vmatmul.mubr.bf16.gmra.mrb[4].mxu1 %v60_v38 }
  0x2b   :  { %339 = vmatprep.mubr.bf16.mxu0 %v703_v1  ;;  %412 = vmatprep.mubr.bf16.mxu1 %v703_v1 }
  0x32   :  { %340 = vmatmul.mubr.bf16.gmra.mrb[8].mxu0 %v61_v41  ;;  %413 = vmatmul.mubr.bf16.gmra.mrb[8].mxu1 %v61_v41 }
  0x33   :  { %349 = vmatprep.mubr.bf16.mxu0 %v703_v1  ;;  %422 = vmatprep.mubr.bf16.mxu1 %v703_v1 }
  0x3a   :  { %350 = vmatmul.mubr.bf16.gmra.mrb[12].mxu0 %v62_v44  ;;  %423 = vmatmul.mubr.bf16.gmra.mrb[12].mxu1 %v62_v44 }
  0xf5   :  { %v321_v56 = vpop.f32.mrb[0].mxu0  ;;  %v394_v57 = vpop.f32.mrb[0].mxu1 }
  0xf6   :  { %v554_v58 = vadd.f32 %v855_v52, %v321_v56  ;;  %v556_v59 = vadd.f32 %v857_v53, %v394_v57  ;;  %v323_v60 = vpop.f32.mrb[1].mxu0  ;;  %v396_v61 = vpop.f32.mrb[1].mxu1 }
  0xf7   :  { %v555_v62 = vadd.f32 %v859_v54, %v323_v60  ;;  %v557_v63 = vadd.f32 %v861_v55, %v396_v61  ;;  %v325_v0 = vpop.f32.mrb[2].mxu0  ;;  %v398_v1 = vpop.f32.mrb[2].mxu1 }
  0xf8   :  { %586 = vst [vmem:[%s994_s3] sm:$0xff] %v554_v58  ;;  %588 = vst [vmem:[%s994_s3 + $0x10] sm:$0xff] %v556_v59  ;;  %v558_v2 = vadd.f32 %v855_v52, %v325_v0  ;;  %v560_v3 = vadd.f32 %v857_v53, %v398_v1  ;;  %v327_v4 = vpop.f32.mrb[3].mxu0  ;;  %v400_v5 = vpop.f32.mrb[3].mxu1 }
  0xf9   :  { %587 = vst [vmem:[%s994_s3 + $0x8] sm:$0xff] %v555_v62  ;;  %589 = vst [vmem:[%s994_s3 + $0x18] sm:$0xff] %v557_v63  ;;  %v559_v6 = vadd.f32 %v859_v54, %v327_v4  ;;  %v561_v7 = vadd.f32 %v861_v55, %v400_v5 }
  0xfa   :  { %590 = vst [vmem:[%s994_s3 + $0x20] sm:$0xff] %v558_v2  ;;  %592 = vst [vmem:[%s994_s3 + $0x30] sm:$0xff] %v560_v3 }
  0xfb   :  { %591 = vst [vmem:[%s994_s3 + $0x28] sm:$0xff] %v559_v6  ;;  %593 = vst [vmem:[%s994_s3 + $0x38] sm:$0xff] %v561_v7 }
  0xfd   :  { %v331_v8 = vpop.f32.mrb[4].mxu0  ;;  %v404_v9 = vpop.f32.mrb[4].mxu1 }
  0xfe   :  { %v562_v10 = vadd.f32 %v855_v52, %v331_v8  ;;  %v564_v11 = vadd.f32 %v857_v53, %v404_v9  ;;  %v333_v12 = vpop.f32.mrb[5].mxu0  ;;  %v406_v13 = vpop.f32.mrb[5].mxu1 }
  0xff   :  { %v563_v14 = vadd.f32 %v859_v54, %v333_v12  ;;  %v565_v15 = vadd.f32 %v861_v55, %v406_v13  ;;  %v335_v16 = vpop.f32.mrb[6].mxu0  ;;  %v408_v17 = vpop.f32.mrb[6].mxu1 }
 0x100   :  { %594 = vst [vmem:[%s994_s3 + $0x40] sm:$0xff] %v562_v10  ;;  %596 = vst [vmem:[%s994_s3 + $0x50] sm:$0xff] %v564_v11  ;;  %v566_v18 = vadd.f32 %v855_v52, %v335_v16  ;;  %v568_v19 = vadd.f32 %v857_v53, %v408_v17  ;;  %v337_v20 = vpop.f32.mrb[7].mxu0  ;;  %v410_v21 = vpop.f32.mrb[7].mxu1 }
 0x101   :  { %595 = vst [vmem:[%s994_s3 + $0x48] sm:$0xff] %v563_v14  ;;  %597 = vst [vmem:[%s994_s3 + $0x58] sm:$0xff] %v565_v15  ;;  %v567_v22 = vadd.f32 %v859_v54, %v337_v20  ;;  %v569_v23 = vadd.f32 %v861_v55, %v410_v21 }
 0x102   :  { %598 = vst [vmem:[%s994_s3 + $0x60] sm:$0xff] %v566_v18  ;;  %600 = vst [vmem:[%s994_s3 + $0x70] sm:$0xff] %v568_v19 }
 0x103   :  { %599 = vst [vmem:[%s994_s3 + $0x68] sm:$0xff] %v567_v22  ;;  %601 = vst [vmem:[%s994_s3 + $0x78] sm:$0xff] %v569_v23 }
 0x105   :  { %v341_v24 = vpop.f32.mrb[8].mxu0  ;;  %v414_v25 = vpop.f32.mrb[8].mxu1 }
 0x106   :  { %v570_v26 = vadd.f32 %v855_v52, %v341_v24  ;;  %v572_v27 = vadd.f32 %v857_v53, %v414_v25  ;;  %v343_v28 = vpop.f32.mrb[9].mxu0  ;;  %v416_v29 = vpop.f32.mrb[9].mxu1 }
 0x107   :  { %v571_v30 = vadd.f32 %v859_v54, %v343_v28  ;;  %v573_v31 = vadd.f32 %v861_v55, %v416_v29  ;;  %v345_v32 = vpop.f32.mrb[10].mxu0  ;;  %v418_v33 = vpop.f32.mrb[10].mxu1 }
 0x108   :  { %602 = vst [vmem:[%s994_s3 + $0x80] sm:$0xff] %v570_v26  ;;  %604 = vst [vmem:[%s994_s3 + $0x90] sm:$0xff] %v572_v27  ;;  %v574_v34 = vadd.f32 %v855_v52, %v345_v32  ;;  %v576_v35 = vadd.f32 %v857_v53, %v418_v33  ;;  %v347_v36 = vpop.f32.mrb[11].mxu0  ;;  %v420_v37 = vpop.f32.mrb[11].mxu1 }
 0x109   :  { %603 = vst [vmem:[%s994_s3 + $0x88] sm:$0xff] %v571_v30  ;;  %605 = vst [vmem:[%s994_s3 + $0x98] sm:$0xff] %v573_v31  ;;  %v575_v38 = vadd.f32 %v859_v54, %v347_v36  ;;  %v577_v39 = vadd.f32 %v861_v55, %v420_v37 }
 0x10a   :  { %606 = vst [vmem:[%s994_s3 + $0xa0] sm:$0xff] %v574_v34  ;;  %608 = vst [vmem:[%s994_s3 + $0xb0] sm:$0xff] %v576_v35 }
 0x10b   :  { %607 = vst [vmem:[%s994_s3 + $0xa8] sm:$0xff] %v575_v38  ;;  %609 = vst [vmem:[%s994_s3 + $0xb8] sm:$0xff] %v577_v39 }
 0x10d   :  { %v351_v40 = vpop.f32.mrb[12].mxu0  ;;  %v424_v41 = vpop.f32.mrb[12].mxu1 }
 0x10e   :  { %v578_v42 = vadd.f32 %v855_v52, %v351_v40  ;;  %v580_v43 = vadd.f32 %v857_v53, %v424_v41  ;;  %v353_v44 = vpop.f32.mrb[13].mxu0  ;;  %v426_v45 = vpop.f32.mrb[13].mxu1 }
 0x10f   :  { %v579_v46 = vadd.f32 %v859_v54, %v353_v44  ;;  %v581_v47 = vadd.f32 %v861_v55, %v426_v45  ;;  %v355_v48 = vpop.f32.mrb[14].mxu0  ;;  %v428_v49 = vpop.f32.mrb[14].mxu1 }
 0x110   :  { %610 = vst [vmem:[%s994_s3 + $0xc0] sm:$0xff] %v578_v42  ;;  %612 = vst [vmem:[%s994_s3 + $0xd0] sm:$0xff] %v580_v43  ;;  %v582_v50 = vadd.f32 %v855_v52, %v355_v48  ;;  %v584_v51 = vadd.f32 %v857_v53, %v428_v49  ;;  %v357_v56 = vpop.f32.mrb[15].mxu0  ;;  %v430_v57 = vpop.f32.mrb[15].mxu1 }
 0x111   :  { %611 = vst [vmem:[%s994_s3 + $0xc8] sm:$0xff] %v579_v46  ;;  %613 = vst [vmem:[%s994_s3 + $0xd8] sm:$0xff] %v581_v47  ;;  %v583_v58 = vadd.f32 %v859_v54, %v357_v56  ;;  %v585_v59 = vadd.f32 %v861_v55, %v430_v57 }
 0x112   :  { %614 = vst [vmem:[%s994_s3 + $0xe0] sm:$0xff] %v582_v50  ;;  %616 = vst [vmem:[%s994_s3 + $0xf0] sm:$0xff] %v584_v51 }
 0x113   :  { %615 = vst [vmem:[%s994_s3 + $0xe8] sm:$0xff] %v583_v58  ;;  %617 = vst [vmem:[%s994_s3 + $0xf8] sm:$0xff] %v585_v59 }

// kernel: lstm_language_model_forward.6
= control target key start
LH: loop header
LB: loop body
LE: loop exit
PB: predicated region body
PF: predicated region fallthrough
CT: control target
= control target key end

     0   :  { %v3045_v1 = vmov 0   ;;  %v3046_v33 = vmov 0.0|0.0   ;;  %s3798_s1 = inlined_call_operand.vmem [shape: bf16[128,512], index: 1, kind: input, shape index: {}]   ;;  %s3799_s0 = inlined_call_operand.vmem [shape: f32[8,8,512], index: 0, kind: input, shape index: {}]   ;;  %s3800_s2 = inlined_call_operand.vmem [shape: f32[8,8,128], index: 2, kind: output, shape index: {}]  }
   0x1   :  { %v3065_v0 = vld [vmem:[%s3798_s1 + $0x4] ss:$16 sps:$4 sm:$0xff]   ;;  %249 = vmatprep.mubr.bf16.mxu0 %v3045_v1  ;;  %290 = vmatprep.mubr.bf16.mxu1 %v3045_v1  ;;  %v3072_v2 = vld [vmem:[%s3798_s1] ss:$16 sps:$4 sm:$0xff]   ;;  %v3095_v6 = vld [vmem:[%s3798_s1 + $0xc] ss:$16 sps:$4 sm:$0xff]  }
   0x2   :  { %217 = vmatprep.subr.bf16.mxu0 %v3065_v0  ;;  %v3078_v3 = vld [vmem:[%s3798_s1 + $0x24] ss:$16 sps:$4 sm:$0xff]   ;;  %v3084_v4 = vld [vmem:[%s3798_s1 + $0x20] ss:$16 sps:$4 sm:$0xff]   ;;  %v3100_v7 = vld [vmem:[%s3798_s1 + $0x8] ss:$16 sps:$4 sm:$0xff]   ;;  %258 = vmatprep.subr.bf16.mxu1 %v3095_v6 }
   0x3   :  { %218 = vmatpush1.bf16.msra.mxu0 %v3072_v2  ;;  %v3090_v5 = vld [vmem:[%s3798_s1 + $0x44] ss:$16 sps:$4 sm:$0xff]   ;;  %v3106_v8 = vld [vmem:[%s3798_s1 + $0x40] ss:$16 sps:$4 sm:$0xff]   ;;  %259 = vmatpush1.bf16.msra.mxu1 %v3100_v7  ;;  %v3119_v10 = vld [vmem:[%s3798_s1 + $0x2c] ss:$16 sps:$4 sm:$0xff]  }
   0x4   :  { %219 = vmatprep.subr.bf16.mxu0 %v3078_v3  ;;  %v3113_v9 = vld [vmem:[%s3798_s1 + $0x64] ss:$16 sps:$4 sm:$0xff]   ;;  %v3124_v11 = vld [vmem:[%s3798_s1 + $0x28] ss:$16 sps:$4 sm:$0xff]   ;;  %260 = vmatprep.subr.bf16.mxu1 %v3119_v10  ;;  %v3131_v12 = vld [vmem:[%s3798_s1 + $0x60] ss:$16 sps:$4 sm:$0xff]  }
   0x5   :  { %v3136_v13 = vld [vmem:[%s3798_s1 + $0x84] ss:$16 sps:$4 sm:$0xff]   ;;  %v3141_v14 = vld [vmem:[%s3798_s1 + $0x4c] ss:$16 sps:$4 sm:$0xff]   ;;  %v3148_v15 = vld [vmem:[%s3798_s1 + $0x48] ss:$16 sps:$4 sm:$0xff]  }
   0x6   :  { %v3154_v16 = vld [vmem:[%s3798_s1 + $0x6c] ss:$16 sps:$4 sm:$0xff]   ;;  %v3160_v17 = vld [vmem:[%s3798_s1 + $0x80] ss:$16 sps:$4 sm:$0xff]   ;;  %v3166_v18 = vld [vmem:[%s3798_s1 + $0xa4] ss:$16 sps:$4 sm:$0xff]  }
   0x7   :  { %220 = vmatpush1.bf16.msra.mxu0 %v3084_v4  ;;  %261 = vmatpush1.bf16.msra.mxu1 %v3124_v11  ;;  %v3172_v19 = vld [vmem:[%s3798_s1 + $0x68] ss:$16 sps:$4 sm:$0xff]   ;;  %v3178_v20 = vld [vmem:[%s3798_s1 + $0x8c] ss:$16 sps:$4 sm:$0xff]   ;;  %v3184_v21 = vld [vmem:[%s3798_s1 + $0xa0] ss:$16 sps:$4 sm:$0xff]  }
   0x8   :  { %221 = vmatprep.subr.bf16.mxu0 %v3090_v5  ;;  %262 = vmatprep.subr.bf16.mxu1 %v3141_v14  ;;  %v3189_v22 = vld [vmem:[%s3798_s1 + $0xc4] ss:$16 sps:$4 sm:$0xff]   ;;  %v3196_v23 = vld [vmem:[%s3798_s1 + $0x88] ss:$16 sps:$4 sm:$0xff]   ;;  %v3201_v24 = vld [vmem:[%s3798_s1 + $0xc0] ss:$16 sps:$4 sm:$0xff]  }
   0x9   :  { %v3207_v25 = vld [vmem:[%s3798_s1 + $0xac] ss:$16 sps:$4 sm:$0xff]   ;;  %v3212_v26 = vld [vmem:[%s3798_s1 + $0xe4] ss:$16 sps:$4 sm:$0xff]   ;;  %v3217_v27 = vld [vmem:[%s3798_s1 + $0xa8] ss:$16 sps:$4 sm:$0xff]  }
   0xa   :  { %v3223_v28 = vld [vmem:[%s3798_s1 + $0xcc] ss:$16 sps:$4 sm:$0xff]   ;;  %v3230_v29 = vld [vmem:[%s3798_s1 + $0xe0] ss:$16 sps:$4 sm:$0xff]   ;;  %v3236_v30 = vld [vmem:[%s3798_s1 + $0xc8] ss:$16 sps:$4 sm:$0xff]  }
   0xb   :  { %222 = vmatpush1.bf16.msra.mxu0 %v3106_v8  ;;  %263 = vmatpush1.bf16.msra.mxu1 %v3148_v15  ;;  %v3242_v31 = vld [vmem:[%s3798_s1 + $0xec] ss:$16 sps:$4 sm:$0xff]   ;;  %v3252_v32 = vld [vmem:[%s3798_s1 + $0xe8] ss:$16 sps:$4 sm:$0xff]   ;;  %v20_v34 = vld [vmem:[%s3799_s0] sm:$0xff] }
   0xc   :  { %223 = vmatprep.subr.bf16.mxu0 %v3113_v9  ;;  %264 = vmatprep.subr.bf16.mxu1 %v3154_v16  ;;  %v21_v35 = vld [vmem:[%s3799_s0 + $0x8] sm:$0xff]  ;;  %v22_v44 = vld [vmem:[%s3799_s0 + $0x10] sm:$0xff]  ;;  %v23_v50 = vld [vmem:[%s3799_s0 + $0x18] sm:$0xff] }
   0xf   :  { %224 = vmatpush1.bf16.msra.mxu0 %v3131_v12  ;;  %265 = vmatpush1.bf16.msra.mxu1 %v3172_v19 }
  0x10   :  { %225 = vmatprep.subr.bf16.mxu0 %v3136_v13  ;;  %266 = vmatprep.subr.bf16.mxu1 %v3178_v20 }
  0x13   :  { %226 = vmatpush1.bf16.msra.mxu0 %v3160_v17  ;;  %267 = vmatpush1.bf16.msra.mxu1 %v3196_v23 }
  0x14   :  { %227 = vmatprep.subr.bf16.mxu0 %v3166_v18  ;;  %268 = vmatprep.subr.bf16.mxu1 %v3207_v25 }
  0x17   :  { %228 = vmatpush1.bf16.msra.mxu0 %v3184_v21  ;;  %269 = vmatpush1.bf16.msra.mxu1 %v3217_v27 }
  0x18   :  { %229 = vmatprep.subr.bf16.mxu0 %v3189_v22  ;;  %270 = vmatprep.subr.bf16.mxu1 %v3223_v28 }
  0x1b   :  { %230 = vmatpush1.bf16.msra.mxu0 %v3201_v24  ;;  %271 = vmatpush1.bf16.msra.mxu1 %v3236_v30 }
  0x1c   :  { %231 = vmatprep.subr.bf16.mxu0 %v3212_v26  ;;  %272 = vmatprep.subr.bf16.mxu1 %v3242_v31 }
  0x1f   :  { %232 = vmatpush1.bf16.msra.mxu0 %v3230_v29  ;;  %273 = vmatpush1.bf16.msra.mxu1 %v3252_v32 }
  0x20   :  { %526 = vmatprep.subr.bf16.mxu0 %v3065_v0  ;;  %567 = vmatprep.subr.bf16.mxu1 %v3095_v6 }
  0x22   :  { %250 = vmatmul.mubr.bf16.vlgmr.msra.gmra.mrb[0].mxu0 %v3046_v33  ;;  %291 = vmatmul.mubr.bf16.vlgmr.msra.gmra.mrb[0].mxu1 %v3046_v33 }
  0x23   :  { %527 = vmatpush1.bf16.msra.mxu0 %v3072_v2  ;;  %558 = vmatprep.mubr.bf16.mxu0 %v3045_v1 }
  0x24   :  { %528 = vmatprep.subr.bf16.mxu0 %v3078_v3  ;;  %568 = vmatpush1.bf16.msra.mxu1 %v3100_v7 }
  0x25   :  { %569 = vmatprep.subr.bf16.mxu1 %v3119_v10  ;;  %599 = vmatprep.mubr.bf16.mxu1 %v3045_v1 }
  0x27   :  { %529 = vmatpush1.bf16.msra.mxu0 %v3084_v4 }
  0x28   :  { %530 = vmatprep.subr.bf16.mxu0 %v3090_v5  ;;  %570 = vmatpush1.bf16.msra.mxu1 %v3124_v11 }
  0x29   :  { %571 = vmatprep.subr.bf16.mxu1 %v3141_v14 }
  0x2b   :  { %531 = vmatpush1.bf16.msra.mxu0 %v3106_v8 }
  0x2c   :  { %532 = vmatprep.subr.bf16.mxu0 %v3113_v9  ;;  %572 = vmatpush1.bf16.msra.mxu1 %v3148_v15 }
  0x2d   :  { %573 = vmatprep.subr.bf16.mxu1 %v3154_v16 }
  0x2f   :  { %533 = vmatpush1.bf16.msra.mxu0 %v3131_v12 }
  0x30   :  { %534 = vmatprep.subr.bf16.mxu0 %v3136_v13  ;;  %574 = vmatpush1.bf16.msra.mxu1 %v3172_v19 }
  0x31   :  { %575 = vmatprep.subr.bf16.mxu1 %v3178_v20 }
  0x33   :  { %535 = vmatpush1.bf16.msra.mxu0 %v3160_v17 }
  0x34   :  { %536 = vmatprep.subr.bf16.mxu0 %v3166_v18  ;;  %576 = vmatpush1.bf16.msra.mxu1 %v3196_v23 }
  0x35   :  { %577 = vmatprep.subr.bf16.mxu1 %v3207_v25 }
  0x37   :  { %537 = vmatpush1.bf16.msra.mxu0 %v3184_v21 }
  0x38   :  { %538 = vmatprep.subr.bf16.mxu0 %v3189_v22  ;;  %578 = vmatpush1.bf16.msra.mxu1 %v3217_v27 }
  0x39   :  { %579 = vmatprep.subr.bf16.mxu1 %v3223_v28 }
  0x3b   :  { %539 = vmatpush1.bf16.msra.mxu0 %v3201_v24 }
  0x3c   :  { %540 = vmatprep.subr.bf16.mxu0 %v3212_v26  ;;  %580 = vmatpush1.bf16.msra.mxu1 %v3236_v30 }
  0x3d   :  { %581 = vmatprep.subr.bf16.mxu1 %v3242_v31 }
  0x3f   :  { %541 = vmatpush1.bf16.msra.mxu0 %v3230_v29 }
  0x40   :  { %836 = vmatprep.subr.bf16.mxu0 %v3065_v0  ;;  %582 = vmatpush1.bf16.msra.mxu1 %v3252_v32 }
  0x41   :  { %877 = vmatprep.subr.bf16.mxu1 %v3095_v6 }
  0xf5   :  { %v251_v36 = vpop.f32.mrb[0].mxu0  ;;  %v292_v45 = vpop.f32.mrb[0].mxu1 }
  0xf6   :  { %v299_v37 = vadd.f32 %v251_v36, %v20_v34  ;;  %v253_v38 = vpop.f32.mrb[1].mxu0  ;;  %v294_v46 = vpop.f32.mrb[1].mxu1  ;;  %v301_v47 = vadd.f32 %v292_v45, %v22_v44 }
  0xf7   :  { %v300_v39 = vadd.f32 %v253_v38, %v21_v35  ;;  %v255_v40 = vpop.f32.mrb[2].mxu0  ;;  %v296_v48 = vpop.f32.mrb[2].mxu1  ;;  %v302_v52 = vadd.f32 %v294_v46, %v23_v50  ;;  %v2539_v38 = vld [vmem:[%s3799_s0 + $0x20] sm:$0xff]  ;;  %v2541_v50 = vld [vmem:[%s3799_s0 + $0x30] sm:$0xff] }
  0xf8   :  { %v2536_v41 = vmul.f32 -1.442695, %v299_v37  ;;  %v256_v42 = vpop.f32.mrb[3].mxu0  ;;  %v297_v49 = vpop.f32.mrb[3].mxu1  ;;  %v2538_v51 = vmul.f32 -1.442695, %v301_v47 }
  0xf9   :  { %v2537_v43 = vmul.f32 -1.442695, %v300_v39  ;;  %v2540_v39 = vld [vmem:[%s3799_s0 + $0x28] sm:$0xff] }
  0xfa   :  { %2917 = vpow2.f32 %v2536_v41 }
  0xfb   :  { %2919 = vpow2.f32 %v2537_v43 }
  0xfc   :  { %2921 = vpow2.f32 %v2538_v51 }
  0xfd   :  { %2923 = vtanh.f32 %v302_v52  ;;  %v2542_v52 = vld [vmem:[%s3799_s0 + $0x38] sm:$0xff] }
 0x104   :  { %v2918_v53 = vpop.eup %2917 }
 0x105   :  { %v2920_v54 = vpop.eup %2919  ;;  %v312_v55 = vadd.f32 1.0, %v2918_v53 }
 0x106   :  { %v313_v56 = vadd.f32 1.0, %v2920_v54  ;;  %v2922_v57 = vpop.eup %2921 }
 0x107   :  { %2925 = vrcp.f32 %v312_v55  ;;  %v2924_v58 = vpop.eup %2923  ;;  %v314_v60 = vadd.f32 1.0, %v2922_v57 }
 0x108   :  { %2927 = vrcp.f32 %v313_v56 }
 0x109   :  { %2929 = vrcp.f32 %v314_v60 }
 0x111   :  { %v2926_v59 = vpop.eup %2925 }
 0x112   :  { %v2928_v61 = vpop.eup %2927  ;;  %v323_v62 = vmul.f32 %v2926_v59, %v2924_v58 }
 0x113   :  { %v322_v63 = vmul.f32 0.0, %v2928_v61  ;;  %v2930_v34 = vpop.eup %2929 }
 0x115   :  { %v3304_v33 = vadd.f32 %v323_v62, %v322_v63 }
 0x117   :  { %2931 = vtanh.f32 %v3304_v33 }
 0x121   :  { %v2932_v35 = vpop.eup %2931 }
 0x122   :  { %v326_v36 = vmul.f32 %v2932_v35, %v2930_v34 }
 0x124   :  { %327 = vst [vmem:[%s3800_s2] sm:$0xff] %v326_v36  ;;  %v333_v37 = vpack.c.bf16 %v326_v36, %v326_v36 }
 0x126   :  { %559 = vmatmul.mubr.bf16.vlgmr.msra.gmra.mrb[4].mxu0 %v333_v37  ;;  %600 = vmatmul.mubr.bf16.vlgmr.msra.gmra.mrb[4].mxu1 %v333_v37 }
 0x127   :  { %837 = vmatpush1.bf16.msra.mxu0 %v3072_v2  ;;  %878 = vmatpush1.bf16.msra.mxu1 %v3100_v7 }
 0x128   :  { %838 = vmatprep.subr.bf16.mxu0 %v3078_v3  ;;  %879 = vmatprep.subr.bf16.mxu1 %v3119_v10 }
 0x129   :  { %868 = vmatprep.mubr.bf16.mxu0 %v3045_v1  ;;  %909 = vmatprep.mubr.bf16.mxu1 %v3045_v1 }
 0x12b   :  { %839 = vmatpush1.bf16.msra.mxu0 %v3084_v4  ;;  %880 = vmatpush1.bf16.msra.mxu1 %v3124_v11 }
 0x12c   :  { %840 = vmatprep.subr.bf16.mxu0 %v3090_v5  ;;  %881 = vmatprep.subr.bf16.mxu1 %v3141_v14 }
 0x12f   :  { %841 = vmatpush1.bf16.msra.mxu0 %v3106_v8  ;;  %882 = vmatpush1.bf16.msra.mxu1 %v3148_v15 }
 0x130   :  { %842 = vmatprep.subr.bf16.mxu0 %v3113_v9  ;;  %883 = vmatprep.subr.bf16.mxu1 %v3154_v16 }
 0x133   :  { %843 = vmatpush1.bf16.msra.mxu0 %v3131_v12  ;;  %884 = vmatpush1.bf16.msra.mxu1 %v3172_v19 }
 0x134   :  { %844 = vmatprep.subr.bf16.mxu0 %v3136_v13  ;;  %885 = vmatprep.subr.bf16.mxu1 %v3178_v20 }
 0x137   :  { %845 = vmatpush1.bf16.msra.mxu0 %v3160_v17  ;;  %886 = vmatpush1.bf16.msra.mxu1 %v3196_v23 }
 0x138   :  { %846 = vmatprep.subr.bf16.mxu0 %v3166_v18  ;;  %887 = vmatprep.subr.bf16.mxu1 %v3207_v25 }
 0x13b   :  { %847 = vmatpush1.bf16.msra.mxu0 %v3184_v21  ;;  %888 = vmatpush1.bf16.msra.mxu1 %v3217_v27 }
 0x13c   :  { %848 = vmatprep.subr.bf16.mxu0 %v3189_v22  ;;  %889 = vmatprep.subr.bf16.mxu1 %v3223_v28 }
 0x13f   :  { %849 = vmatpush1.bf16.msra.mxu0 %v3201_v24  ;;  %890 = vmatpush1.bf16.msra.mxu1 %v3236_v30 }
 0x140   :  { %850 = vmatprep.subr.bf16.mxu0 %v3212_v26  ;;  %891 = vmatprep.subr.bf16.mxu1 %v3242_v31 }
 0x143   :  { %851 = vmatpush1.bf16.msra.mxu0 %v3230_v29  ;;  %892 = vmatpush1.bf16.msra.mxu1 %v3252_v32 }
 0x144   :  { %1146 = vmatprep.subr.bf16.mxu0 %v3065_v0  ;;  %1187 = vmatprep.subr.bf16.mxu1 %v3095_v6 }
 0x1f9   :  { %v560_v40 = vpop.f32.mrb[4].mxu0  ;;  %v601_v41 = vpop.f32.mrb[4].mxu1 }
 0x1fa   :  { %v608_v42 = vadd.f32 %v2539_v38, %v560_v40  ;;  %v562_v43 = vpop.f32.mrb[5].mxu0  ;;  %v603_v44 = vpop.f32.mrb[5].mxu1  ;;  %v610_v51 = vadd.f32 %v2541_v50, %v601_v41  ;;  %v3458_v50 = vld [vmem:[%s3798_s1 + $0x28] ss:$16 sps:$4 sm:$0xff]  }
 0x1fb   :  { %v609_v45 = vadd.f32 %v2540_v39, %v562_v43  ;;  %v564_v46 = vpop.f32.mrb[6].mxu0  ;;  %v605_v47 = vpop.f32.mrb[6].mxu1  ;;  %v611_v53 = vadd.f32 %v2542_v52, %v603_v44  ;;  %v3472_v52 = vld [vmem:[%s3798_s1 + $0x4c] ss:$16 sps:$4 sm:$0xff]  }
 0x1fc   :  { %v2575_v48 = vmul.f32 -1.442695, %v608_v42  ;;  %v565_v0 = vpop.f32.mrb[7].mxu0  ;;  %v606_v49 = vpop.f32.mrb[7].mxu1  ;;  %v2577_v54 = vmul.f32 -1.442695, %v610_v51 }
 0x1fd   :  { %v2576_v6 = vmul.f32 -1.442695, %v609_v45  ;;  %v3419_v45 = vld [vmem:[%s3798_s1 + $0x4] ss:$16 sps:$4 sm:$0xff]   ;;  %v3424_v46 = vld [vmem:[%s3798_s1 + $0xc] ss:$16 sps:$4 sm:$0xff]  }
 0x1fe   :  { %2933 = vpow2.f32 %v2575_v48  ;;  %v3429_v47 = vld [vmem:[%s3798_s1] ss:$16 sps:$4 sm:$0xff]   ;;  %v3434_v48 = vld [vmem:[%s3798_s1 + $0x8] ss:$16 sps:$4 sm:$0xff]   ;;  %v3443_v0 = vld [vmem:[%s3798_s1 + $0x24] ss:$16 sps:$4 sm:$0xff]  }
 0x1ff   :  { %2935 = vpow2.f32 %v2576_v6  ;;  %v3448_v49 = vld [vmem:[%s3798_s1 + $0x2c] ss:$16 sps:$4 sm:$0xff]   ;;  %v3453_v6 = vld [vmem:[%s3798_s1 + $0x20] ss:$16 sps:$4 sm:$0xff]   ;;  %v3467_v51 = vld [vmem:[%s3798_s1 + $0x44] ss:$16 sps:$4 sm:$0xff]  }
 0x200   :  { %2937 = vtanh.f32 %v611_v53  ;;  %v3477_v53 = vld [vmem:[%s3798_s1 + $0x40] ss:$16 sps:$4 sm:$0xff]  }
 0x201   :  { %2939 = vpow2.f32 %v2577_v54  ;;  %v3482_v54 = vld [vmem:[%s3798_s1 + $0x48] ss:$16 sps:$4 sm:$0xff]  }
 0x208   :  { %v2934_v55 = vpop.eup %2933 }
 0x209   :  { %v621_v56 = vadd.f32 1.0, %v2934_v55  ;;  %v2936_v57 = vpop.eup %2935  ;;  %v3491_v55 = vld [vmem:[%s3798_s1 + $0x64] ss:$16 sps:$4 sm:$0xff]  }
 0x20a   :  { %v622_v58 = vadd.f32 1.0, %v2936_v57  ;;  %v2938_v59 = vpop.eup %2937  ;;  %v3501_v57 = vld [vmem:[%s3798_s1 + $0x60] ss:$16 sps:$4 sm:$0xff]  }
 0x20b   :  { %2941 = vrcp.f32 %v621_v56  ;;  %v2940_v60 = vpop.eup %2939  ;;  %v3496_v56 = vld [vmem:[%s3798_s1 + $0x6c] ss:$16 sps:$4 sm:$0xff]  }
 0x20c   :  { %2943 = vrcp.f32 %v622_v58  ;;  %v623_v34 = vadd.f32 1.0, %v2940_v60  ;;  %v3506_v58 = vld [vmem:[%s3798_s1 + $0x68] ss:$16 sps:$4 sm:$0xff]   ;;  %v3520_v60 = vld [vmem:[%s3798_s1 + $0x8c] ss:$16 sps:$4 sm:$0xff]  }
 0x20e   :  { %2945 = vrcp.f32 %v623_v34  ;;  %v3544_v34 = vld [vmem:[%s3798_s1 + $0xa4] ss:$16 sps:$4 sm:$0xff]  }
 0x215   :  { %v2942_v61 = vpop.eup %2941 }
 0x216   :  { %v632_v62 = vmul.f32 %v2942_v61, %v2938_v59  ;;  %v2944_v63 = vpop.eup %2943  ;;  %v3515_v59 = vld [vmem:[%s3798_s1 + $0x84] ss:$16 sps:$4 sm:$0xff]   ;;  %v3525_v61 = vld [vmem:[%s3798_s1 + $0x80] ss:$16 sps:$4 sm:$0xff]  }
 0x217   :  { %v631_v35 = vmul.f32 %v2944_v63, %v3304_v33  ;;  %v3539_v63 = vld [vmem:[%s3798_s1 + $0xa0] ss:$16 sps:$4 sm:$0xff]  }
 0x218   :  { %v2946_v37 = vpop.eup %2945 }
 0x219   :  { %v3357_v36 = vadd.f32 %v632_v62, %v631_v35  ;;  %v3530_v62 = vld [vmem:[%s3798_s1 + $0x88] ss:$16 sps:$4 sm:$0xff]  }
 0x21a   :  { %v3549_v35 = vld [vmem:[%s3798_s1 + $0xa8] ss:$16 sps:$4 sm:$0xff]  }
 0x21b   :  { %2947 = vtanh.f32 %v3357_v36 }
 0x225   :  { %v2948_v38 = vpop.eup %2947 }
 0x226   :  { %v635_v39 = vmul.f32 %v2948_v38, %v2946_v37  ;;  %v3559_v37 = vld [vmem:[%s3798_s1 + $0xc4] ss:$16 sps:$4 sm:$0xff]   ;;  %v3565_v38 = vld [vmem:[%s3798_s1 + $0xcc] ss:$16 sps:$4 sm:$0xff]  }
 0x228   :  { %2578 = vst [vmem:[%s3800_s2 + $0x8] sm:$0xff] %v635_v39  ;;  %v643_v40 = vpack.c.bf16 %v635_v39, %v635_v39  ;;  %v3573_v39 = vld [vmem:[%s3798_s1 + $0xc0] ss:$16 sps:$4 sm:$0xff]  }
 0x22a   :  { %869 = vmatmul.mubr.bf16.vlgmr.msra.gmra.mrb[8].mxu0 %v643_v40  ;;  %910 = vmatmul.mubr.bf16.vlgmr.msra.gmra.mrb[8].mxu1 %v643_v40  ;;  %v3578_v40 = vld [vmem:[%s3798_s1 + $0xc8] ss:$16 sps:$4 sm:$0xff]  }
 0x22b   :  { %1147 = vmatpush1.bf16.msra.mxu0 %v3072_v2  ;;  %1188 = vmatpush1.bf16.msra.mxu1 %v3100_v7  ;;  %v2579_v2 = vld [vmem:[%s3799_s0 + $0x40] sm:$0xff] }
 0x22c   :  { %1148 = vmatprep.subr.bf16.mxu0 %v3078_v3  ;;  %1189 = vmatprep.subr.bf16.mxu1 %v3119_v10  ;;  %v2580_v3 = vld [vmem:[%s3799_s0 + $0x48] sm:$0xff] }
 0x22d   :  { %1178 = vmatprep.mubr.bf16.mxu0 %v3045_v1  ;;  %1219 = vmatprep.mubr.bf16.mxu1 %v3045_v1 }
 0x22f   :  { %1149 = vmatpush1.bf16.msra.mxu0 %v3084_v4  ;;  %1190 = vmatpush1.bf16.msra.mxu1 %v3124_v11 }
 0x230   :  { %1150 = vmatprep.subr.bf16.mxu0 %v3090_v5  ;;  %1191 = vmatprep.subr.bf16.mxu1 %v3141_v14 }
 0x233   :  { %1151 = vmatpush1.bf16.msra.mxu0 %v3106_v8  ;;  %1192 = vmatpush1.bf16.msra.mxu1 %v3148_v15 }
 0x234   :  { %1152 = vmatprep.subr.bf16.mxu0 %v3113_v9  ;;  %1193 = vmatprep.subr.bf16.mxu1 %v3154_v16 }
 0x237   :  { %1153 = vmatpush1.bf16.msra.mxu0 %v3131_v12  ;;  %1194 = vmatpush1.bf16.msra.mxu1 %v3172_v19  ;;  %v2582_v19 = vld [vmem:[%s3799_s0 + $0x58] sm:$0xff] }
 0x238   :  { %1154 = vmatprep.subr.bf16.mxu0 %v3136_v13  ;;  %1195 = vmatprep.subr.bf16.mxu1 %v3178_v20 }
 0x23b   :  { %1155 = vmatpush1.bf16.msra.mxu0 %v3160_v17  ;;  %1196 = vmatpush1.bf16.msra.mxu1 %v3196_v23  ;;  %v2581_v17 = vld [vmem:[%s3799_s0 + $0x50] sm:$0xff] }
 0x23c   :  { %1156 = vmatprep.subr.bf16.mxu0 %v3166_v18  ;;  %1197 = vmatprep.subr.bf16.mxu1 %v3207_v25 }
 0x23f   :  { %1157 = vmatpush1.bf16.msra.mxu0 %v3184_v21  ;;  %1198 = vmatpush1.bf16.msra.mxu1 %v3217_v27 }
 0x240   :  { %1158 = vmatprep.subr.bf16.mxu0 %v3189_v22  ;;  %1199 = vmatprep.subr.bf16.mxu1 %v3223_v28 }
 0x243   :  { %1159 = vmatpush1.bf16.msra.mxu0 %v3201_v24  ;;  %1200 = vmatpush1.bf16.msra.mxu1 %v3236_v30 }
 0x244   :  { %1160 = vmatprep.subr.bf16.mxu0 %v3212_v26  ;;  %1201 = vmatprep.subr.bf16.mxu1 %v3242_v31 }
 0x247   :  { %1161 = vmatpush1.bf16.msra.mxu0 %v3230_v29  ;;  %1202 = vmatpush1.bf16.msra.mxu1 %v3252_v32 }
 0x248   :  { %1456 = vmatprep.subr.bf16.mxu0 %v3419_v45  ;;  %1497 = vmatprep.subr.bf16.mxu1 %v3424_v46 }
 0x2fd   :  { %v870_v4 = vpop.f32.mrb[8].mxu0  ;;  %v911_v5 = vpop.f32.mrb[8].mxu1 }
 0x2fe   :  { %v918_v7 = vadd.f32 %v2579_v2, %v870_v4  ;;  %v872_v8 = vpop.f32.mrb[9].mxu0  ;;  %v913_v9 = vpop.f32.mrb[9].mxu1  ;;  %v920_v18 = vadd.f32 %v2581_v17, %v911_v5  ;;  %v3585_v2 = vld [vmem:[%s3798_s1 + $0xe4] ss:$16 sps:$4 sm:$0xff]   ;;  %v3597_v4 = vld [vmem:[%s3798_s1 + $0xe0] ss:$16 sps:$4 sm:$0xff]  }
 0x2ff   :  { %v919_v10 = vadd.f32 %v2580_v3, %v872_v8  ;;  %v874_v11 = vpop.f32.mrb[10].mxu0  ;;  %v915_v12 = vpop.f32.mrb[10].mxu1  ;;  %v921_v20 = vadd.f32 %v2582_v19, %v913_v9  ;;  %v3590_v3 = vld [vmem:[%s3798_s1 + $0xec] ss:$16 sps:$4 sm:$0xff]   ;;  %v3602_v5 = vld [vmem:[%s3798_s1 + $0xe8] ss:$16 sps:$4 sm:$0xff]  }
 0x300   :  { %v2615_v13 = vmul.f32 -1.442695, %v918_v7  ;;  %v875_v14 = vpop.f32.mrb[11].mxu0  ;;  %v916_v15 = vpop.f32.mrb[11].mxu1  ;;  %v2617_v21 = vmul.f32 -1.442695, %v920_v18 }
 0x301   :  { %v2616_v16 = vmul.f32 -1.442695, %v919_v10  ;;  %v2619_v7 = vld [vmem:[%s3799_s0 + $0x60] sm:$0xff]  ;;  %v2620_v8 = vld [vmem:[%s3799_s0 + $0x68] sm:$0xff] }
 0x302   :  { %2949 = vpow2.f32 %v2615_v13 }
 0x303   :  { %2951 = vpow2.f32 %v2616_v16 }
 0x304   :  { %2953 = vtanh.f32 %v921_v20 }
 0x305   :  { %2955 = vpow2.f32 %v2617_v21  ;;  %v2621_v21 = vld [vmem:[%s3799_s0 + $0x70] sm:$0xff] }
 0x30c   :  { %v2950_v22 = vpop.eup %2949 }
 0x30d   :  { %v931_v23 = vadd.f32 1.0, %v2950_v22  ;;  %v2952_v24 = vpop.eup %2951 }
 0x30e   :  { %v932_v25 = vadd.f32 1.0, %v2952_v24  ;;  %v2954_v26 = vpop.eup %2953 }
 0x30f   :  { %2957 = vrcp.f32 %v931_v23  ;;  %v2956_v27 = vpop.eup %2955  ;;  %v2622_v23 = vld [vmem:[%s3799_s0 + $0x78] sm:$0xff] }
 0x310   :  { %2959 = vrcp.f32 %v932_v25  ;;  %v933_v31 = vadd.f32 1.0, %v2956_v27 }
 0x312   :  { %2961 = vrcp.f32 %v933_v31 }
 0x319   :  { %v2958_v28 = vpop.eup %2957 }
 0x31a   :  { %v942_v29 = vmul.f32 %v2958_v28, %v2954_v26  ;;  %v2960_v30 = vpop.eup %2959 }
 0x31b   :  { %v941_v32 = vmul.f32 %v2960_v30, %v3357_v36  ;;  %v3554_v36 = vld [vmem:[%s3798_s1 + $0xac] ss:$16 sps:$4 sm:$0xff]  }
 0x31c   :  { %v2962_v41 = vpop.eup %2961 }
 0x31d   :  { %v3408_v33 = vadd.f32 %v942_v29, %v941_v32 }
 0x31f   :  { %2963 = vtanh.f32 %v3408_v33 }
 0x329   :  { %v2964_v42 = vpop.eup %2963 }
 0x32a   :  { %v945_v43 = vmul.f32 %v2964_v42, %v2962_v41 }
 0x32c   :  { %2618 = vst [vmem:[%s3800_s2 + $0x10] sm:$0xff] %v945_v43  ;;  %v953_v44 = vpack.c.bf16 %v945_v43, %v945_v43 }
 0x32e   :  { %1179 = vmatmul.mubr.bf16.vlgmr.msra.gmra.mrb[12].mxu0 %v953_v44  ;;  %1220 = vmatmul.mubr.bf16.vlgmr.msra.gmra.mrb[12].mxu1 %v953_v44 }
 0x32f   :  { %1488 = vmatprep.mubr.bf16.mxu0 %v3045_v1  ;;  %1529 = vmatprep.mubr.bf16.mxu1 %v3045_v1 }
 0x330   :  { %1457 = vmatpush1.bf16.msra.mxu0 %v3429_v47  ;;  %1498 = vmatpush1.bf16.msra.mxu1 %v3434_v48 }
 0x331   :  { %1458 = vmatprep.subr.bf16.mxu0 %v3443_v0  ;;  %1499 = vmatprep.subr.bf16.mxu1 %v3448_v49 }
 0x334   :  { %1459 = vmatpush1.bf16.msra.mxu0 %v3453_v6  ;;  %1500 = vmatpush1.bf16.msra.mxu1 %v3458_v50 }
 0x335   :  { %1460 = vmatprep.subr.bf16.mxu0 %v3467_v51  ;;  %1501 = vmatprep.subr.bf16.mxu1 %v3472_v52 }
 0x338   :  { %1461 = vmatpush1.bf16.msra.mxu0 %v3477_v53  ;;  %1502 = vmatpush1.bf16.msra.mxu1 %v3482_v54 }
 0x339   :  { %1462 = vmatprep.subr.bf16.mxu0 %v3491_v55  ;;  %1503 = vmatprep.subr.bf16.mxu1 %v3496_v56 }
 0x33c   :  { %1463 = vmatpush1.bf16.msra.mxu0 %v3501_v57  ;;  %1504 = vmatpush1.bf16.msra.mxu1 %v3506_v58 }
 0x33d   :  { %1464 = vmatprep.subr.bf16.mxu0 %v3515_v59  ;;  %1505 = vmatprep.subr.bf16.mxu1 %v3520_v60 }
 0x340   :  { %1465 = vmatpush1.bf16.msra.mxu0 %v3525_v61  ;;  %1506 = vmatpush1.bf16.msra.mxu1 %v3530_v62 }
 0x341   :  { %1466 = vmatprep.subr.bf16.mxu0 %v3544_v34  ;;  %1507 = vmatprep.subr.bf16.mxu1 %v3554_v36 }
 0x344   :  { %1467 = vmatpush1.bf16.msra.mxu0 %v3539_v63  ;;  %1508 = vmatpush1.bf16.msra.mxu1 %v3549_v35 }
 0x345   :  { %1468 = vmatprep.subr.bf16.mxu0 %v3559_v37  ;;  %1509 = vmatprep.subr.bf16.mxu1 %v3565_v38 }
 0x348   :  { %1469 = vmatpush1.bf16.msra.mxu0 %v3573_v39  ;;  %1510 = vmatpush1.bf16.msra.mxu1 %v3578_v40 }
 0x349   :  { %1470 = vmatprep.subr.bf16.mxu0 %v3585_v2  ;;  %1511 = vmatprep.subr.bf16.mxu1 %v3590_v3 }
 0x34c   :  { %1471 = vmatpush1.bf16.msra.mxu0 %v3597_v4  ;;  %1512 = vmatpush1.bf16.msra.mxu1 %v3602_v5 }
 0x34d   :  { %1766 = vmatprep.subr.bf16.mxu0 %v3419_v45  ;;  %1807 = vmatprep.subr.bf16.mxu1 %v3424_v46 }
 0x401   :  { %v1180_v9 = vpop.f32.mrb[12].mxu0  ;;  %v1221_v10 = vpop.f32.mrb[12].mxu1 }
 0x402   :  { %v1228_v11 = vadd.f32 %v2619_v7, %v1180_v9  ;;  %v1182_v12 = vpop.f32.mrb[13].mxu0  ;;  %v1223_v13 = vpop.f32.mrb[13].mxu1  ;;  %v1230_v22 = vadd.f32 %v2621_v21, %v1221_v10 }
 0x403   :  { %v1229_v14 = vadd.f32 %v2620_v8, %v1182_v12  ;;  %v1184_v15 = vpop.f32.mrb[14].mxu0  ;;  %v1225_v16 = vpop.f32.mrb[14].mxu1  ;;  %v1231_v24 = vadd.f32 %v2622_v23, %v1223_v13  ;;  %v2660_v12 = vld [vmem:[%s3799_s0 + $0x88] sm:$0xff] }
 0x404   :  { %v2655_v17 = vmul.f32 -1.442695, %v1228_v11  ;;  %v1185_v18 = vpop.f32.mrb[15].mxu0  ;;  %v1226_v19 = vpop.f32.mrb[15].mxu1  ;;  %v2657_v25 = vmul.f32 -1.442695, %v1230_v22 }
 0x405   :  { %v2656_v20 = vmul.f32 -1.442695, %v1229_v14 }
 0x406   :  { %2965 = vpow2.f32 %v2655_v17 }
 0x407   :  { %2967 = vpow2.f32 %v2656_v20 }
 0x408   :  { %2969 = vtanh.f32 %v1231_v24 }
 0x409   :  { %2971 = vpow2.f32 %v2657_v25  ;;  %v2661_v25 = vld [vmem:[%s3799_s0 + $0x90] sm:$0xff] }
 0x410   :  { %v2966_v26 = vpop.eup %2965 }
 0x411   :  { %v1241_v27 = vadd.f32 1.0, %v2966_v26  ;;  %v2968_v28 = vpop.eup %2967 }
 0x412   :  { %v1242_v29 = vadd.f32 1.0, %v2968_v28  ;;  %v2970_v30 = vpop.eup %2969 }
 0x413   :  { %2973 = vrcp.f32 %v1241_v27  ;;  %v2972_v31 = vpop.eup %2971  ;;  %v2662_v27 = vld [vmem:[%s3799_s0 + $0x98] sm:$0xff] }
 0x414   :  { %2975 = vrcp.f32 %v1242_v29  ;;  %v1243_v43 = vadd.f32 1.0, %v2972_v31 }
 0x416   :  { %2977 = vrcp.f32 %v1243_v43 }
 0x41d   :  { %v2974_v32 = vpop.eup %2973 }
 0x41e   :  { %v1252_v41 = vmul.f32 %v2974_v32, %v2970_v30  ;;  %v2976_v42 = vpop.eup %2975 }
 0x41f   :  { %v1251_v44 = vmul.f32 %v2976_v42, %v3408_v33  ;;  %v2659_v33 = vld [vmem:[%s3799_s0 + $0x80] sm:$0xff] }
 0x420   :  { %v2978_v8 = vpop.eup %2977 }
 0x421   :  { %v3623_v7 = vadd.f32 %v1252_v41, %v1251_v44 }
 0x423   :  { %2979 = vtanh.f32 %v3623_v7 }
 0x42d   :  { %v2980_v9 = vpop.eup %2979 }
 0x42e   :  { %v1255_v10 = vmul.f32 %v2980_v9, %v2978_v8 }
 0x430   :  { %2658 = vst [vmem:[%s3800_s2 + $0x18] sm:$0xff] %v1255_v10  ;;  %v1263_v11 = vpack.c.bf16 %v1255_v10, %v1255_v10 }
 0x432   :  { %1489 = vmatmul.mubr.bf16.vlgmr.msra.gmra.mrb[16].mxu0 %v1263_v11  ;;  %1530 = vmatmul.mubr.bf16.vlgmr.msra.gmra.mrb[16].mxu1 %v1263_v11 }
 0x433   :  { %1767 = vmatpush1.bf16.msra.mxu0 %v3429_v47  ;;  %1808 = vmatpush1.bf16.msra.mxu1 %v3434_v48 }
 0x434   :  { %1768 = vmatprep.subr.bf16.mxu0 %v3443_v0  ;;  %1809 = vmatprep.subr.bf16.mxu1 %v3448_v49 }
 0x435   :  { %1798 = vmatprep.mubr.bf16.mxu0 %v3045_v1  ;;  %1839 = vmatprep.mubr.bf16.mxu1 %v3045_v1 }
 0x437   :  { %1769 = vmatpush1.bf16.msra.mxu0 %v3453_v6  ;;  %1810 = vmatpush1.bf16.msra.mxu1 %v3458_v50 }
 0x438   :  { %1770 = vmatprep.subr.bf16.mxu0 %v3467_v51  ;;  %1811 = vmatprep.subr.bf16.mxu1 %v3472_v52 }
 0x43b   :  { %1771 = vmatpush1.bf16.msra.mxu0 %v3477_v53  ;;  %1812 = vmatpush1.bf16.msra.mxu1 %v3482_v54 }
 0x43c   :  { %1772 = vmatprep.subr.bf16.mxu0 %v3491_v55  ;;  %1813 = vmatprep.subr.bf16.mxu1 %v3496_v56 }
 0x43f   :  { %1773 = vmatpush1.bf16.msra.mxu0 %v3501_v57  ;;  %1814 = vmatpush1.bf16.msra.mxu1 %v3506_v58 }
 0x440   :  { %1774 = vmatprep.subr.bf16.mxu0 %v3515_v59  ;;  %1815 = vmatprep.subr.bf16.mxu1 %v3520_v60 }
 0x443   :  { %1775 = vmatpush1.bf16.msra.mxu0 %v3525_v61  ;;  %1816 = vmatpush1.bf16.msra.mxu1 %v3530_v62 }
 0x444   :  { %1776 = vmatprep.subr.bf16.mxu0 %v3544_v34  ;;  %1817 = vmatprep.subr.bf16.mxu1 %v3554_v36 }
 0x447   :  { %1777 = vmatpush1.bf16.msra.mxu0 %v3539_v63  ;;  %1818 = vmatpush1.bf16.msra.mxu1 %v3549_v35 }
 0x448   :  { %1778 = vmatprep.subr.bf16.mxu0 %v3559_v37  ;;  %1819 = vmatprep.subr.bf16.mxu1 %v3565_v38 }
 0x44b   :  { %1779 = vmatpush1.bf16.msra.mxu0 %v3573_v39  ;;  %1820 = vmatpush1.bf16.msra.mxu1 %v3578_v40 }
 0x44c   :  { %1780 = vmatprep.subr.bf16.mxu0 %v3585_v2  ;;  %1821 = vmatprep.subr.bf16.mxu1 %v3590_v3 }
 0x44f   :  { %1781 = vmatpush1.bf16.msra.mxu0 %v3597_v4  ;;  %1822 = vmatpush1.bf16.msra.mxu1 %v3602_v5 }
 0x450   :  { %2076 = vmatprep.subr.bf16.mxu0 %v3419_v45  ;;  %2117 = vmatprep.subr.bf16.mxu1 %v3424_v46 }
 0x505   :  { %v1490_v13 = vpop.f32.mrb[16].mxu0  ;;  %v1531_v14 = vpop.f32.mrb[16].mxu1 }
 0x506   :  { %v1538_v15 = vadd.f32 %v2659_v33, %v1490_v13  ;;  %v1492_v16 = vpop.f32.mrb[17].mxu0  ;;  %v1533_v17 = vpop.f32.mrb[17].mxu1  ;;  %v1540_v26 = vadd.f32 %v2661_v25, %v1531_v14 }
 0x507   :  { %v1539_v18 = vadd.f32 %v2660_v12, %v1492_v16  ;;  %v1494_v19 = vpop.f32.mrb[18].mxu0  ;;  %v1535_v20 = vpop.f32.mrb[18].mxu1  ;;  %v1541_v28 = vadd.f32 %v2662_v27, %v1533_v17  ;;  %v2700_v16 = vld [vmem:[%s3799_s0 + $0xa8] sm:$0xff]  ;;  %v2701_v27 = vld [vmem:[%s3799_s0 + $0xb0] sm:$0xff] }
 0x508   :  { %v2695_v21 = vmul.f32 -1.442695, %v1538_v15  ;;  %v1495_v22 = vpop.f32.mrb[19].mxu0  ;;  %v1536_v23 = vpop.f32.mrb[19].mxu1  ;;  %v2697_v29 = vmul.f32 -1.442695, %v1540_v26 }
 0x509   :  { %v2696_v24 = vmul.f32 -1.442695, %v1539_v18 }
 0x50a   :  { %2981 = vpow2.f32 %v2695_v21 }
 0x50b   :  { %2983 = vpow2.f32 %v2696_v24 }
 0x50c   :  { %2985 = vtanh.f32 %v1541_v28 }
 0x50d   :  { %2987 = vpow2.f32 %v2697_v29  ;;  %v2702_v29 = vld [vmem:[%s3799_s0 + $0xb8] sm:$0xff] }
 0x514   :  { %v2982_v30 = vpop.eup %2981 }
 0x515   :  { %v1551_v31 = vadd.f32 1.0, %v2982_v30  ;;  %v2984_v32 = vpop.eup %2983 }
 0x516   :  { %v1552_v41 = vadd.f32 1.0, %v2984_v32  ;;  %v2986_v42 = vpop.eup %2985 }
 0x517   :  { %2989 = vrcp.f32 %v1551_v31  ;;  %v2988_v43 = vpop.eup %2987 }
 0x518   :  { %2991 = vrcp.f32 %v1552_v41  ;;  %v1553_v10 = vadd.f32 1.0, %v2988_v43 }
 0x51a   :  { %2993 = vrcp.f32 %v1553_v10 }
 0x521   :  { %v2990_v44 = vpop.eup %2989 }
 0x522   :  { %v1562_v8 = vmul.f32 %v2990_v44, %v2986_v42  ;;  %v2992_v9 = vpop.eup %2991 }
 0x523   :  { %v1561_v11 = vmul.f32 %v2992_v9, %v3623_v7  ;;  %v2699_v7 = vld [vmem:[%s3799_s0 + $0xa0] sm:$0xff] }
 0x524   :  { %v2994_v12 = vpop.eup %2993 }
 0x525   :  { %v3676_v33 = vadd.f32 %v1562_v8, %v1561_v11 }
 0x527   :  { %2995 = vtanh.f32 %v3676_v33 }
 0x531   :  { %v2996_v13 = vpop.eup %2995 }
 0x532   :  { %v1565_v14 = vmul.f32 %v2996_v13, %v2994_v12 }
 0x534   :  { %2698 = vst [vmem:[%s3800_s2 + $0x20] sm:$0xff] %v1565_v14  ;;  %v1573_v15 = vpack.c.bf16 %v1565_v14, %v1565_v14 }
 0x536   :  { %1799 = vmatmul.mubr.bf16.vlgmr.msra.gmra.mrb[20].mxu0 %v1573_v15  ;;  %1840 = vmatmul.mubr.bf16.vlgmr.msra.gmra.mrb[20].mxu1 %v1573_v15 }
 0x537   :  { %2077 = vmatpush1.bf16.msra.mxu0 %v3429_v47  ;;  %2118 = vmatpush1.bf16.msra.mxu1 %v3434_v48 }
 0x538   :  { %2078 = vmatprep.subr.bf16.mxu0 %v3443_v0  ;;  %2119 = vmatprep.subr.bf16.mxu1 %v3448_v49 }
 0x539   :  { %2108 = vmatprep.mubr.bf16.mxu0 %v3045_v1  ;;  %2149 = vmatprep.mubr.bf16.mxu1 %v3045_v1 }
 0x53b   :  { %2079 = vmatpush1.bf16.msra.mxu0 %v3453_v6  ;;  %2120 = vmatpush1.bf16.msra.mxu1 %v3458_v50 }
 0x53c   :  { %2080 = vmatprep.subr.bf16.mxu0 %v3467_v51  ;;  %2121 = vmatprep.subr.bf16.mxu1 %v3472_v52 }
 0x53f   :  { %2081 = vmatpush1.bf16.msra.mxu0 %v3477_v53  ;;  %2122 = vmatpush1.bf16.msra.mxu1 %v3482_v54 }
 0x540   :  { %2082 = vmatprep.subr.bf16.mxu0 %v3491_v55  ;;  %2123 = vmatprep.subr.bf16.mxu1 %v3496_v56 }
 0x543   :  { %2083 = vmatpush1.bf16.msra.mxu0 %v3501_v57  ;;  %2124 = vmatpush1.bf16.msra.mxu1 %v3506_v58 }
 0x544   :  { %2084 = vmatprep.subr.bf16.mxu0 %v3515_v59  ;;  %2125 = vmatprep.subr.bf16.mxu1 %v3520_v60 }
 0x547   :  { %2085 = vmatpush1.bf16.msra.mxu0 %v3525_v61  ;;  %2126 = vmatpush1.bf16.msra.mxu1 %v3530_v62 }
 0x548   :  { %2086 = vmatprep.subr.bf16.mxu0 %v3544_v34  ;;  %2127 = vmatprep.subr.bf16.mxu1 %v3554_v36 }
 0x54b   :  { %2087 = vmatpush1.bf16.msra.mxu0 %v3539_v63  ;;  %2128 = vmatpush1.bf16.msra.mxu1 %v3549_v35 }
 0x54c   :  { %2088 = vmatprep.subr.bf16.mxu0 %v3559_v37  ;;  %2129 = vmatprep.subr.bf16.mxu1 %v3565_v38 }
 0x54f   :  { %2089 = vmatpush1.bf16.msra.mxu0 %v3573_v39  ;;  %2130 = vmatpush1.bf16.msra.mxu1 %v3578_v40 }
 0x550   :  { %2090 = vmatprep.subr.bf16.mxu0 %v3585_v2  ;;  %2131 = vmatprep.subr.bf16.mxu1 %v3590_v3 }
 0x553   :  { %2091 = vmatpush1.bf16.msra.mxu0 %v3597_v4  ;;  %2132 = vmatpush1.bf16.msra.mxu1 %v3602_v5 }
 0x554   :  { %2386 = vmatprep.subr.bf16.mxu0 %v3419_v45  ;;  %2427 = vmatprep.subr.bf16.mxu1 %v3424_v46 }
 0x609   :  { %v1800_v17 = vpop.f32.mrb[20].mxu0  ;;  %v1841_v18 = vpop.f32.mrb[20].mxu1 }
 0x60a   :  { %v1848_v19 = vadd.f32 %v2699_v7, %v1800_v17  ;;  %v1802_v20 = vpop.f32.mrb[21].mxu0  ;;  %v1843_v21 = vpop.f32.mrb[21].mxu1  ;;  %v1850_v28 = vadd.f32 %v2701_v27, %v1841_v18 }
 0x60b   :  { %v1849_v22 = vadd.f32 %v2700_v16, %v1802_v20  ;;  %v1804_v23 = vpop.f32.mrb[22].mxu0  ;;  %v1845_v24 = vpop.f32.mrb[22].mxu1  ;;  %v1851_v30 = vadd.f32 %v2702_v29, %v1843_v21  ;;  %v2779_v21 = vld [vmem:[%s3799_s0 + $0xe0] sm:$0xff] }
 0x60c   :  { %v2735_v25 = vmul.f32 -1.442695, %v1848_v19  ;;  %v1805_v45 = vpop.f32.mrb[23].mxu0  ;;  %v1846_v26 = vpop.f32.mrb[23].mxu1  ;;  %v2737_v31 = vmul.f32 -1.442695, %v1850_v28 }
 0x60d   :  { %v2736_v46 = vmul.f32 -1.442695, %v1849_v22  ;;  %v2780_v22 = vld [vmem:[%s3799_s0 + $0xe8] sm:$0xff] }
 0x60e   :  { %2997 = vpow2.f32 %v2735_v25 }
 0x60f   :  { %2999 = vpow2.f32 %v2736_v46 }
 0x610   :  { %3001 = vtanh.f32 %v1851_v30 }
 0x611   :  { %3003 = vpow2.f32 %v2737_v31 }
 0x618   :  { %v2998_v32 = vpop.eup %2997 }
 0x619   :  { %v1861_v41 = vadd.f32 1.0, %v2998_v32  ;;  %v3000_v42 = vpop.eup %2999 }
 0x61a   :  { %v1862_v43 = vadd.f32 1.0, %v3000_v42  ;;  %v3002_v44 = vpop.eup %3001 }
 0x61b   :  { %3005 = vrcp.f32 %v1861_v41  ;;  %v3004_v8 = vpop.eup %3003  ;;  %v2781_v41 = vld [vmem:[%s3799_s0 + $0xf0] sm:$0xff] }
 0x61c   :  { %3007 = vrcp.f32 %v1862_v43  ;;  %v1863_v12 = vadd.f32 1.0, %v3004_v8  ;;  %v2782_v43 = vld [vmem:[%s3799_s0 + $0xf8] sm:$0xff] }
 0x61e   :  { %3009 = vrcp.f32 %v1863_v12 }
 0x625   :  { %v3006_v9 = vpop.eup %3005 }
 0x626   :  { %v1872_v10 = vmul.f32 %v3006_v9, %v3002_v44  ;;  %v3008_v11 = vpop.eup %3007 }
 0x627   :  { %v1871_v13 = vmul.f32 %v3008_v11, %v3676_v33 }
 0x628   :  { %v3010_v15 = vpop.eup %3009 }
 0x629   :  { %v3729_v14 = vadd.f32 %v1872_v10, %v1871_v13 }
 0x62b   :  { %3011 = vtanh.f32 %v3729_v14 }
 0x635   :  { %v3012_v7 = vpop.eup %3011 }
 0x636   :  { %v1875_v16 = vmul.f32 %v3012_v7, %v3010_v15 }
 0x638   :  { %2738 = vst [vmem:[%s3800_s2 + $0x28] sm:$0xff] %v1875_v16  ;;  %v1883_v17 = vpack.c.bf16 %v1875_v16, %v1875_v16 }
 0x63a   :  { %2109 = vmatmul.mubr.bf16.vlgmr.msra.gmra.mrb[24].mxu0 %v1883_v17  ;;  %2150 = vmatmul.mubr.bf16.vlgmr.msra.gmra.mrb[24].mxu1 %v1883_v17 }
 0x63b   :  { %2387 = vmatpush1.bf16.msra.mxu0 %v3429_v47  ;;  %2428 = vmatpush1.bf16.msra.mxu1 %v3434_v48  ;;  %v2740_v47 = vld [vmem:[%s3799_s0 + $0xc8] sm:$0xff] }
 0x63c   :  { %2388 = vmatprep.subr.bf16.mxu0 %v3443_v0  ;;  %2429 = vmatprep.subr.bf16.mxu1 %v3448_v49 }
 0x63d   :  { %2418 = vmatprep.mubr.bf16.mxu0 %v3045_v1  ;;  %2459 = vmatprep.mubr.bf16.mxu1 %v3045_v1  ;;  %v2739_v1 = vld [vmem:[%s3799_s0 + $0xc0] sm:$0xff] }
 0x63f   :  { %2389 = vmatpush1.bf16.msra.mxu0 %v3453_v6  ;;  %2430 = vmatpush1.bf16.msra.mxu1 %v3458_v50 }
 0x640   :  { %2390 = vmatprep.subr.bf16.mxu0 %v3467_v51  ;;  %2431 = vmatprep.subr.bf16.mxu1 %v3472_v52 }
 0x643   :  { %2391 = vmatpush1.bf16.msra.mxu0 %v3477_v53  ;;  %2432 = vmatpush1.bf16.msra.mxu1 %v3482_v54 }
 0x644   :  { %2392 = vmatprep.subr.bf16.mxu0 %v3491_v55  ;;  %2433 = vmatprep.subr.bf16.mxu1 %v3496_v56 }
 0x647   :  { %2393 = vmatpush1.bf16.msra.mxu0 %v3501_v57  ;;  %2434 = vmatpush1.bf16.msra.mxu1 %v3506_v58  ;;  %v2741_v58 = vld [vmem:[%s3799_s0 + $0xd0] sm:$0xff] }
 0x648   :  { %2394 = vmatprep.subr.bf16.mxu0 %v3515_v59  ;;  %2435 = vmatprep.subr.bf16.mxu1 %v3520_v60  ;;  %v2742_v60 = vld [vmem:[%s3799_s0 + $0xd8] sm:$0xff] }
 0x64b   :  { %2395 = vmatpush1.bf16.msra.mxu0 %v3525_v61  ;;  %2436 = vmatpush1.bf16.msra.mxu1 %v3530_v62 }
 0x64c   :  { %2396 = vmatprep.subr.bf16.mxu0 %v3544_v34  ;;  %2437 = vmatprep.subr.bf16.mxu1 %v3554_v36 }
 0x64f   :  { %2397 = vmatpush1.bf16.msra.mxu0 %v3539_v63  ;;  %2438 = vmatpush1.bf16.msra.mxu1 %v3549_v35 }
 0x650   :  { %2398 = vmatprep.subr.bf16.mxu0 %v3559_v37  ;;  %2439 = vmatprep.subr.bf16.mxu1 %v3565_v38 }
 0x653   :  { %2399 = vmatpush1.bf16.msra.mxu0 %v3573_v39  ;;  %2440 = vmatpush1.bf16.msra.mxu1 %v3578_v40 }
 0x654   :  { %2400 = vmatprep.subr.bf16.mxu0 %v3585_v2  ;;  %2441 = vmatprep.subr.bf16.mxu1 %v3590_v3 }
 0x657   :  { %2401 = vmatpush1.bf16.msra.mxu0 %v3597_v4  ;;  %2442 = vmatpush1.bf16.msra.mxu1 %v3602_v5 }
 0x70d   :  { %v2110_v48 = vpop.f32.mrb[24].mxu0  ;;  %v2151_v0 = vpop.f32.mrb[24].mxu1 }
 0x70e   :  { %v2158_v49 = vadd.f32 %v2739_v1, %v2110_v48  ;;  %v2112_v6 = vpop.f32.mrb[25].mxu0  ;;  %v2153_v50 = vpop.f32.mrb[25].mxu1  ;;  %v2160_v59 = vadd.f32 %v2741_v58, %v2151_v0 }
 0x70f   :  { %v2159_v51 = vadd.f32 %v2740_v47, %v2112_v6  ;;  %v2114_v52 = vpop.f32.mrb[26].mxu0  ;;  %v2155_v53 = vpop.f32.mrb[26].mxu1  ;;  %v2161_v61 = vadd.f32 %v2742_v60, %v2153_v50 }
 0x710   :  { %v2775_v54 = vmul.f32 -1.442695, %v2158_v49  ;;  %v2115_v55 = vpop.f32.mrb[27].mxu0  ;;  %v2156_v56 = vpop.f32.mrb[27].mxu1  ;;  %v2777_v62 = vmul.f32 -1.442695, %v2160_v59 }
 0x711   :  { %v2776_v57 = vmul.f32 -1.442695, %v2159_v51 }
 0x712   :  { %3013 = vpow2.f32 %v2775_v54 }
 0x713   :  { %3015 = vpow2.f32 %v2776_v57 }
 0x714   :  { %3017 = vtanh.f32 %v2161_v61 }
 0x715   :  { %3019 = vpow2.f32 %v2777_v62 }
 0x71c   :  { %v3014_v63 = vpop.eup %3013 }
 0x71d   :  { %v2171_v34 = vadd.f32 1.0, %v3014_v63  ;;  %v3016_v35 = vpop.eup %3015 }
 0x71e   :  { %v2172_v36 = vadd.f32 1.0, %v3016_v35  ;;  %v3018_v37 = vpop.eup %3017 }
 0x71f   :  { %3021 = vrcp.f32 %v2171_v34  ;;  %v3020_v38 = vpop.eup %3019 }
 0x720   :  { %3023 = vrcp.f32 %v2172_v36  ;;  %v2173_v3 = vadd.f32 1.0, %v3020_v38 }
 0x722   :  { %3025 = vrcp.f32 %v2173_v3 }
 0x729   :  { %v3022_v39 = vpop.eup %3021 }
 0x72a   :  { %v2182_v40 = vmul.f32 %v3022_v39, %v3018_v37  ;;  %v3024_v2 = vpop.eup %3023 }
 0x72b   :  { %v2181_v4 = vmul.f32 %v3024_v2, %v3729_v14 }
 0x72c   :  { %v3026_v33 = vpop.eup %3025 }
 0x72d   :  { %v2183_v5 = vadd.f32 %v2182_v40, %v2181_v4 }
 0x72f   :  { %3027 = vtanh.f32 %v2183_v5 }
 0x739   :  { %v3028_v18 = vpop.eup %3027 }
 0x73a   :  { %v2185_v19 = vmul.f32 %v3028_v18, %v3026_v33 }
 0x73c   :  { %2778 = vst [vmem:[%s3800_s2 + $0x30] sm:$0xff] %v2185_v19  ;;  %v2193_v20 = vpack.c.bf16 %v2185_v19, %v2185_v19 }
 0x73e   :  { %2419 = vmatmul.mubr.bf16.vlgmr.msra.gmra.mrb[28].mxu0 %v2193_v20  ;;  %2460 = vmatmul.mubr.bf16.vlgmr.msra.gmra.mrb[28].mxu1 %v2193_v20 }
 0x811   :  { %v2420_v23 = vpop.f32.mrb[28].mxu0  ;;  %v2461_v24 = vpop.f32.mrb[28].mxu1 }
 0x812   :  { %v2468_v25 = vadd.f32 %v2779_v21, %v2420_v23  ;;  %v2422_v45 = vpop.f32.mrb[29].mxu0  ;;  %v2463_v26 = vpop.f32.mrb[29].mxu1  ;;  %v2470_v42 = vadd.f32 %v2781_v41, %v2461_v24 }
 0x813   :  { %v2469_v46 = vadd.f32 %v2780_v22, %v2422_v45  ;;  %v2424_v27 = vpop.f32.mrb[30].mxu0  ;;  %v2465_v28 = vpop.f32.mrb[30].mxu1  ;;  %v2471_v44 = vadd.f32 %v2782_v43, %v2463_v26 }
 0x814   :  { %v2815_v29 = vmul.f32 -1.442695, %v2468_v25  ;;  %v2425_v30 = vpop.f32.mrb[31].mxu0  ;;  %v2466_v31 = vpop.f32.mrb[31].mxu1  ;;  %v2817_v8 = vmul.f32 -1.442695, %v2470_v42 }
 0x815   :  { %v2816_v32 = vmul.f32 -1.442695, %v2469_v46 }
 0x816   :  { %3029 = vpow2.f32 %v2815_v29 }
 0x817   :  { %3031 = vpow2.f32 %v2816_v32 }
 0x818   :  { %3033 = vtanh.f32 %v2471_v44 }
 0x819   :  { %3035 = vpow2.f32 %v2817_v8 }
 0x820   :  { %v3030_v9 = vpop.eup %3029 }
 0x821   :  { %v2481_v10 = vadd.f32 1.0, %v3030_v9  ;;  %v3032_v11 = vpop.eup %3031 }
 0x822   :  { %v2482_v12 = vadd.f32 1.0, %v3032_v11  ;;  %v3034_v13 = vpop.eup %3033 }
 0x823   :  { %3037 = vrcp.f32 %v2481_v10  ;;  %v3036_v14 = vpop.eup %3035 }
 0x824   :  { %3039 = vrcp.f32 %v2482_v12  ;;  %v2483_v17 = vadd.f32 1.0, %v3036_v14 }
 0x826   :  { %3041 = vrcp.f32 %v2483_v17 }
 0x82d   :  { %v3038_v15 = vpop.eup %3037 }
 0x82e   :  { %v2492_v7 = vmul.f32 %v3038_v15, %v3034_v13  ;;  %v3040_v16 = vpop.eup %3039 }
 0x82f   :  { %v2491_v1 = vmul.f32 %v3040_v16, %v2183_v5 }
 0x830   :  { %v3042_v48 = vpop.eup %3041 }
 0x831   :  { %v2493_v47 = vadd.f32 %v2492_v7, %v2491_v1 }
 0x833   :  { %3043 = vtanh.f32 %v2493_v47 }
 0x83d   :  { %v3044_v0 = vpop.eup %3043 }
 0x83e   :  { %v2495_v49 = vmul.f32 %v3044_v0, %v3042_v48 }
 0x840   :  { %2818 = vst [vmem:[%s3800_s2 + $0x38] sm:$0xff] %v2495_v49 }

</bundles_post_ra>
